<compile_context>
chip_gen: v7x
topology: tpu7x:2x2x1
jax: 0.10.0
libtpu: 0.0.40
codegen_flags: <defaults>
</compile_context>

<pallas_src>
import jax
import jax.numpy as jnp
from jax import lax
from jax.experimental import pallas as pl
from jax.experimental.pallas import tpu as pltpu


# -----------------------------------------------------------------------------
# Pallas kernel: whole recurrence + FC head in one invocation (all VMEM-resident).
#   x2d_ref : (T*Bp, Dp)    bf16  time-major input, rows [t*Bp:(t+1)*Bp] = x_t
#   w1ih_ref: (Dp, Hp)      bf16  W1_ih^T
#   b1_ref  : (1, Hp)       f32   b1_ih + b1_hh
#   wf_ref  : (2Hp, 2Hp)    bf16  [[W1_hh^T, W2_ih^T], [0, W2_hh^T]]
#   b2_ref  : (1, Hp)       f32   b2_ih + b2_hh
#   wfc_ref : (T, Hp, Cp)   bf16  per-timestep FC weight slabs
#   bfc_ref : (1, Cp)       f32   FC bias
#   out_ref : (Bp, Cp)      f32   logits (padded)
#   p1b_ref : (T, Bp, 2Hp)  f32   scratch: per-step bias slabs [P1[t] | b2]
#   h2_ref  : (T, Bp, Hp)   f32   scratch: layer-2 hidden states
# -----------------------------------------------------------------------------
def rnn_wavefront_kernel(x2d_ref, w1ih_ref, b1_ref, wf_ref, b2_ref,
                         wfc_ref, bfc_ref, out_ref, p1b_ref, h2_ref):
    T, Bp, Hp = h2_ref.shape
    Cp = out_ref.shape[1]

    # ---- Prologue (off the serial chain): layer-1 input projection for all t as one
    # MXU burst, b1 folded in; stored as [P1[t] | b2] slabs so the recurrence body is
    # exactly dot -> add-slab -> tanh with no per-step broadcasts or concats.
    p1 = jnp.dot(x2d_ref[...], w1ih_ref[...],
                 preferred_element_type=jnp.float32) + b1_ref[...]     # (T*Bp, Hp) f32
    b2_row = jnp.broadcast_to(b2_ref[...], (Bp, Hp))                   # hoisted once
    for t in range(T):                                                 # static stores
        p1b_ref[t, :, :Hp] = p1[t * Bp:(t + 1) * Bp, :]
        p1b_ref[t, :, Hp:] = b2_row

    # ---- Wavefront step 0: h1(0) = tanh(P1[0])  (h1(-1) = h2(-1) = 0).
    h1_0 = jnp.tanh(p1[:Bp, :])
    state0 = jnp.concatenate(
        [h1_0, jnp.zeros((Bp, Hp), jnp.float32)], axis=-1)             # [h1(0) | h2(-1)=0]

    # ---- Wavefront recurrence: step s produces [h1(s) | h2(s-1)] with ONE fused
    # N=2Hp bf16 matmul + ONE tanh.  Weights are read from VMEM at the dot site.
    def step(s, state):
        z = jnp.dot(state.astype(jnp.bfloat16), wf_ref[...],
                    preferred_element_type=jnp.float32)                # (Bp, 2Hp) f32
        # At s == T only the h2 half is live; reusing slab T-1 keeps the correct b2 in
        # the right half (the stale P1 only feeds the discarded h1 half).
        res = jnp.tanh(z + p1b_ref[jnp.minimum(s, T - 1)])
        h2_ref[s - 1] = res[:, Hp:]
        return res

    lax.fori_loop(1, T + 1, step, state0, unroll=True)

    # ---- FC head: T independent dots, one MXU burst after the loop, off the chain.
    # TODO(synk): on v7x this acc += dot pattern can accumulate in the MRB directly.
    def fc_step(t, acc):
        return acc + jnp.dot(h2_ref[t].astype(jnp.bfloat16), wfc_ref[t],
                             preferred_element_type=jnp.float32)

    acc = lax.fori_loop(0, T, fc_step,
                        jnp.zeros((Bp, Cp), jnp.float32), unroll=True)
    out_ref[...] = acc + bfc_ref[...]


# -----------------------------------------------------------------------------
# Wrapper: pad to TPU-friendly shapes, pre-arrange/fuse weights, call the kernel.
# -----------------------------------------------------------------------------
def _round_up(n, m):
    return ((n + m - 1) // m) * m


@jax.jit
def rnn_forward(x, params):
    """x: (B, T, D_in) float32 batch-first.  Returns logits (B, C) float32."""
    f32, bf16 = jnp.float32, jnp.bfloat16
    B, T, D_in = x.shape
    H = params["w1_hh"].shape[0]
    C = params["b_fc"].shape[0]

    Bp = _round_up(B, 8)        # sublane multiple
    Dp = _round_up(D_in, 128)   # lane multiples
    Hp = _round_up(H, 128)
    Cp = _round_up(C, 128)

    def pad2(a, r, c, dtype):
        return jnp.zeros((r, c), dtype).at[:a.shape[0], :a.shape[1]].set(a.astype(dtype))

    # Time-major, zero-padded, bf16 matmul operand, flattened to (T*Bp, Dp).
    x_tm = jnp.transpose(x, (1, 0, 2))                                  # (T, B, D_in)
    x_p = jnp.zeros((T, Bp, Dp), bf16).at[:, :B, :D_in].set(x_tm.astype(bf16))
    x2d = x_p.reshape(T * Bp, Dp)

    # Layer-1 input projection weight + combined biases (biases stay f32).
    w1ih = pad2(params["w1_ih"].T, Dp, Hp, bf16)                        # (Dp, Hp)
    b1 = pad2((params["b1_ih"] + params["b1_hh"]).reshape(1, H), 1, Hp, f32)
    b2 = pad2((params["b2_ih"] + params["b2_hh"]).reshape(1, H), 1, Hp, f32)

    # Fused wavefront weight: [h1(s-1) | h2(s-2)] @ wf = [pre_h1(s)-P1 | pre_h2(s-1)-b2].
    w1hh = pad2(params["w1_hh"].T, Hp, Hp, bf16)
    w2ih = pad2(params["w2_ih"].T, Hp, Hp, bf16)
    w2hh = pad2(params["w2_hh"].T, Hp, Hp, bf16)
    wf = jnp.concatenate(
        [jnp.concatenate([w1hh, w2ih], axis=1),
         jnp.concatenate([jnp.zeros((Hp, Hp), bf16), w2hh], axis=1)], axis=0)  # (2Hp, 2Hp)

    # FC weight (C, T*H) -> per-timestep slabs (T, Hp, Cp) matching the time-major flatten.
    wfc = jnp.transpose(params["w_fc"].reshape(C, T, H), (1, 2, 0))     # (T, H, C)
    wfc_p = jnp.zeros((T, Hp, Cp), bf16).at[:, :H, :C].set(wfc.astype(bf16))
    bfc = pad2(params["b_fc"].reshape(1, C), 1, Cp, f32)

    # Single grid-less invocation: ~0.5 MiB total VMEM at these shapes, so everything is
    # resident and there is zero per-grid-step pipeline overhead on the serial recurrence.
    # TODO(synk): at production shapes (T=128, H=C=1024+) add a grid over T with BlockSpec
    # pipelining for x/wfc (h1/h2 kept in scratch across "arbitrary" steps) and a leading
    # "parallel" batch axis for v7x megacore; v7x has only 64 MiB physical VMEM.
    out_p = pl.pallas_call(
        rnn_wavefront_kernel,
        out_shape=jax.ShapeDtypeStruct((Bp, Cp), f32),
        scratch_shapes=[pltpu.VMEM((T, Bp, 2 * Hp), f32),
                        pltpu.VMEM((T, Bp, Hp), f32)],
    )(x2d, w1ih, b1, wf, b2, wfc_p, bfc)

    return out_p[:B, :C]


# -----------------------------------------------------------------------------
# References
# -----------------------------------------------------------------------------
def rnn_forward_ref(x, params):
    """Exact f32 reference mirroring torch.nn.RNN(num_layers=2, batch_first=True) + Linear."""
    B, T, _ = x.shape
    H = params["w1_hh"].shape[0]

    def run_layer(xs, w_ih, w_hh, b_ih, b_hh):
        def step(h, xt):
            h = jnp.tanh(xt @ w_ih.T + b_ih + h @ w_hh.T + b_hh)
            return h, h
        _, ys = lax.scan(step, jnp.zeros((B, H), jnp.float32), jnp.swapaxes(xs, 0, 1))
        return jnp.swapaxes(ys, 0, 1)                                   # (B, T, H)

    out1 = run_layer(x, params["w1_ih"], params["w1_hh"], params["b1_ih"], params["b1_hh"])
    out2 = run_layer(out1, params["w2_ih"], params["w2_hh"], params["b2_ih"], params["b2_hh"])
    return out2.reshape(B, -1) @ params["w_fc"].T + params["b_fc"]


def rnn_forward_ref_bf16(x, params):
    """Same math with bf16 matmul operands / f32 accumulation (the kernel's rounding points)."""
    bf = lambda a: a.astype(jnp.bfloat16)
    mm = lambda a, b: jnp.dot(bf(a), bf(b), preferred_element_type=jnp.float32)
    B, T, _ = x.shape
    H = params["w1_hh"].shape[0]
    b1 = params["b1_ih"] + params["b1_hh"]
    b2 = params["b2_ih"] + params["b2_hh"]
    h1 = jnp.zeros((B, H), jnp.float32)
    h2 = jnp.zeros((B, H), jnp.float32)
    outs = []
    for t in range(T):
        h1 = jnp.tanh(mm(x[:, t], params["w1_ih"].T) + mm(h1, params["w1_hh"].T) + b1)
        h2 = jnp.tanh(mm(h1, params["w2_ih"].T) + mm(h2, params["w2_hh"].T) + b2)
        outs.append(h2)
    flat = jnp.concatenate(outs, axis=-1)                               # (B, T*H) time-major
    return mm(flat, params["w_fc"].T) + params["b_fc"]


# -----------------------------------------------------------------------------
# Main
# -----------------------------------------------------------------------------
if __name__ == "__main__":
    # Small shapes consistent with the module (input/hidden/seq scaled down).
    B, T, D_in, H, C = 2, 8, 16, 32, 10

    key = jax.random.PRNGKey(0)
    ks = jax.random.split(key, 11)
    bound = 1.0 / jnp.sqrt(H)   # PyTorch default uniform init bound

    def u(k, shape):
        return jax.random.uniform(k, shape, jnp.float32, -bound, bound)

    params = {
        "w1_ih": u(ks[0], (H, D_in)),
        "w1_hh": u(ks[1], (H, H)),
        "b1_ih": u(ks[2], (H,)),
        "b1_hh": u(ks[3], (H,)),
        "w2_ih": u(ks[4], (H, H)),
        "w2_hh": u(ks[5], (H, H)),
        "b2_ih": u(ks[6], (H,)),
        "b2_hh": u(ks[7], (H,)),
        "w_fc": u(ks[8], (C, T * H)),
        "b_fc": u(ks[9], (C,)),
    }
    x = jax.random.normal(ks[10], (B, T, D_in), jnp.float32)

    out = jax.block_until_ready(rnn_forward(x, params))
    assert out.shape == (B, C)

    # Structural check: against a reference with identical bf16-operand rounding.
    ref_bf16 = rnn_forward_ref_bf16(x, params)
    err_s = jnp.max(jnp.abs(out - ref_bf16))
    assert jnp.allclose(out, ref_bf16, atol=5e-3, rtol=5e-3), f"structural err {err_s}"

    # Fidelity check: against the exact f32 module semantics (bf16 matmul operands only
    # add quantization noise, hence the looser tolerance).
    ref_f32 = rnn_forward_ref(x, params)
    err_q = jnp.max(jnp.abs(out - ref_f32))
    assert jnp.allclose(out, ref_f32, atol=5e-2, rtol=5e-2), f"quantization err {err_q}"

    print("KERNEL_OK")
</pallas_src>

<mosaic_0001>
module attributes {stable_mosaic.version = 11 : i64} {
  func.func @rnn_wavefront_kernel(%arg0: memref<64x128xbf16, #tpu.memory_space<vmem>>, %arg1: memref<128x128xbf16, #tpu.memory_space<vmem>>, %arg2: memref<1x128xf32, #tpu.memory_space<vmem>>, %arg3: memref<256x256xbf16, #tpu.memory_space<vmem>>, %arg4: memref<1x128xf32, #tpu.memory_space<vmem>>, %arg5: memref<8x128x128xbf16, #tpu.memory_space<vmem>>, %arg6: memref<1x128xf32, #tpu.memory_space<vmem>>, %arg7: memref<8x128xf32, #tpu.memory_space<vmem>>, %arg8: memref<8x8x256xf32, #tpu.memory_space<vmem>>, %arg9: memref<8x8x128xf32, #tpu.memory_space<vmem>>) attributes {dimension_semantics = [], scalar_prefetch = 0 : i64, scratch_operands = 2 : i64, tpu.core_type = #tpu.core_type<tc>} {
    %c0 = arith.constant 0 : index
    %c0_0 = arith.constant 0 : index
    %0 = vector.load %arg0[%c0, %c0_0] : memref<64x128xbf16, #tpu.memory_space<vmem>>, vector<64x128xbf16>
    %c0_1 = arith.constant 0 : index
    %c0_2 = arith.constant 0 : index
    %1 = vector.load %arg1[%c0_1, %c0_2] : memref<128x128xbf16, #tpu.memory_space<vmem>>, vector<128x128xbf16>
    %cst = arith.constant dense<0.000000e+00> : vector<64x128xf32>
    %2 = tpu.matmul %0, %1, %cst {dimension_numbers = #tpu.dot_dimension_numbers<[1], [0], [0], [1], [0, 0, 1, 1], [], []>} : vector<64x128xbf16>, vector<128x128xbf16>, vector<64x128xf32> -> vector<64x128xf32>
    %c0_3 = arith.constant 0 : index
    %c0_4 = arith.constant 0 : index
    %3 = vector.load %arg2[%c0_3, %c0_4] : memref<1x128xf32, #tpu.memory_space<vmem>>, vector<1x128xf32>
    %4 = vector.broadcast %3 : vector<1x128xf32> to vector<64x128xf32>
    %5 = arith.addf %2, %4 : vector<64x128xf32>
    %c0_5 = arith.constant 0 : index
    %c0_6 = arith.constant 0 : index
    %6 = vector.load %arg4[%c0_5, %c0_6] : memref<1x128xf32, #tpu.memory_space<vmem>>, vector<1x128xf32>
    %7 = vector.shape_cast %6 : vector<1x128xf32> to vector<1x128xf32>
    %8 = vector.broadcast %7 : vector<1x128xf32> to vector<8x128xf32>
    %9 = vector.extract_strided_slice %5 {offsets = [0, 0], sizes = [8, 128], strides = [1, 1]} : vector<64x128xf32> to vector<8x128xf32>
    %c0_7 = arith.constant 0 : index
    %c0_8 = arith.constant 0 : index
    %c0_9 = arith.constant 0 : index
    %10 = vector.load %arg8[%c0_7, %c0_8, %c0_9] : memref<8x8x256xf32, #tpu.memory_space<vmem>>, vector<1x8x128xf32>
    %11 = vector.shape_cast %10 : vector<1x8x128xf32> to vector<8x128xf32>
    %12 = vector.shape_cast %9 : vector<8x128xf32> to vector<1x8x128xf32>
    tpu.vector_store %arg8[%c0_7, %c0_8, %c0_9], %12 {strides = array<i32>} : memref<8x8x256xf32, #tpu.memory_space<vmem>>, vector<1x8x128xf32>,
    %c0_10 = arith.constant 0 : index
    %c0_11 = arith.constant 0 : index
    %c128 = arith.constant 128 : index
    %13 = vector.load %arg8[%c0_10, %c0_11, %c128] : memref<8x8x256xf32, #tpu.memory_space<vmem>>, vector<1x8x128xf32>
    %14 = vector.shape_cast %13 : vector<1x8x128xf32> to vector<8x128xf32>
    %15 = vector.shape_cast %8 : vector<8x128xf32> to vector<1x8x128xf32>
    tpu.vector_store %arg8[%c0_10, %c0_11, %c128], %15 {strides = array<i32>} : memref<8x8x256xf32, #tpu.memory_space<vmem>>, vector<1x8x128xf32>,
    %16 = vector.extract_strided_slice %5 {offsets = [8, 0], sizes = [8, 128], strides = [1, 1]} : vector<64x128xf32> to vector<8x128xf32>
    %c1 = arith.constant 1 : index
    %c0_12 = arith.constant 0 : index
    %c0_13 = arith.constant 0 : index
    %17 = vector.load %arg8[%c1, %c0_12, %c0_13] : memref<8x8x256xf32, #tpu.memory_space<vmem>>, vector<1x8x128xf32>
    %18 = vector.shape_cast %17 : vector<1x8x128xf32> to vector<8x128xf32>
    %19 = vector.shape_cast %16 : vector<8x128xf32> to vector<1x8x128xf32>
    tpu.vector_store %arg8[%c1, %c0_12, %c0_13], %19 {strides = array<i32>} : memref<8x8x256xf32, #tpu.memory_space<vmem>>, vector<1x8x128xf32>,
    %c1_14 = arith.constant 1 : index
    %c0_15 = arith.constant 0 : index
    %c128_16 = arith.constant 128 : index
    %20 = vector.load %arg8[%c1_14, %c0_15, %c128_16] : memref<8x8x256xf32, #tpu.memory_space<vmem>>, vector<1x8x128xf32>
    %21 = vector.shape_cast %20 : vector<1x8x128xf32> to vector<8x128xf32>
    %22 = vector.shape_cast %8 : vector<8x128xf32> to vector<1x8x128xf32>
    tpu.vector_store %arg8[%c1_14, %c0_15, %c128_16], %22 {strides = array<i32>} : memref<8x8x256xf32, #tpu.memory_space<vmem>>, vector<1x8x128xf32>,
    %23 = vector.extract_strided_slice %5 {offsets = [16, 0], sizes = [8, 128], strides = [1, 1]} : vector<64x128xf32> to vector<8x128xf32>
    %c2 = arith.constant 2 : index
    %c0_17 = arith.constant 0 : index
    %c0_18 = arith.constant 0 : index
    %24 = vector.load %arg8[%c2, %c0_17, %c0_18] : memref<8x8x256xf32, #tpu.memory_space<vmem>>, vector<1x8x128xf32>
    %25 = vector.shape_cast %24 : vector<1x8x128xf32> to vector<8x128xf32>
    %26 = vector.shape_cast %23 : vector<8x128xf32> to vector<1x8x128xf32>
    tpu.vector_store %arg8[%c2, %c0_17, %c0_18], %26 {strides = array<i32>} : memref<8x8x256xf32, #tpu.memory_space<vmem>>, vector<1x8x128xf32>,
    %c2_19 = arith.constant 2 : index
    %c0_20 = arith.constant 0 : index
    %c128_21 = arith.constant 128 : index
    %27 = vector.load %arg8[%c2_19, %c0_20, %c128_21] : memref<8x8x256xf32, #tpu.memory_space<vmem>>, vector<1x8x128xf32>
    %28 = vector.shape_cast %27 : vector<1x8x128xf32> to vector<8x128xf32>
    %29 = vector.shape_cast %8 : vector<8x128xf32> to vector<1x8x128xf32>
    tpu.vector_store %arg8[%c2_19, %c0_20, %c128_21], %29 {strides = array<i32>} : memref<8x8x256xf32, #tpu.memory_space<vmem>>, vector<1x8x128xf32>,
    %30 = vector.extract_strided_slice %5 {offsets = [24, 0], sizes = [8, 128], strides = [1, 1]} : vector<64x128xf32> to vector<8x128xf32>
    %c3 = arith.constant 3 : index
    %c0_22 = arith.constant 0 : index
    %c0_23 = arith.constant 0 : index
    %31 = vector.load %arg8[%c3, %c0_22, %c0_23] : memref<8x8x256xf32, #tpu.memory_space<vmem>>, vector<1x8x128xf32>
    %32 = vector.shape_cast %31 : vector<1x8x128xf32> to vector<8x128xf32>
    %33 = vector.shape_cast %30 : vector<8x128xf32> to vector<1x8x128xf32>
    tpu.vector_store %arg8[%c3, %c0_22, %c0_23], %33 {strides = array<i32>} : memref<8x8x256xf32, #tpu.memory_space<vmem>>, vector<1x8x128xf32>,
    %c3_24 = arith.constant 3 : index
    %c0_25 = arith.constant 0 : index
    %c128_26 = arith.constant 128 : index
    %34 = vector.load %arg8[%c3_24, %c0_25, %c128_26] : memref<8x8x256xf32, #tpu.memory_space<vmem>>, vector<1x8x128xf32>
    %35 = vector.shape_cast %34 : vector<1x8x128xf32> to vector<8x128xf32>
    %36 = vector.shape_cast %8 : vector<8x128xf32> to vector<1x8x128xf32>
    tpu.vector_store %arg8[%c3_24, %c0_25, %c128_26], %36 {strides = array<i32>} : memref<8x8x256xf32, #tpu.memory_space<vmem>>, vector<1x8x128xf32>,
    %37 = vector.extract_strided_slice %5 {offsets = [32, 0], sizes = [8, 128], strides = [1, 1]} : vector<64x128xf32> to vector<8x128xf32>
    %c4 = arith.constant 4 : index
    %c0_27 = arith.constant 0 : index
    %c0_28 = arith.constant 0 : index
    %38 = vector.load %arg8[%c4, %c0_27, %c0_28] : memref<8x8x256xf32, #tpu.memory_space<vmem>>, vector<1x8x128xf32>
    %39 = vector.shape_cast %38 : vector<1x8x128xf32> to vector<8x128xf32>
    %40 = vector.shape_cast %37 : vector<8x128xf32> to vector<1x8x128xf32>
    tpu.vector_store %arg8[%c4, %c0_27, %c0_28], %40 {strides = array<i32>} : memref<8x8x256xf32, #tpu.memory_space<vmem>>, vector<1x8x128xf32>,
    %c4_29 = arith.constant 4 : index
    %c0_30 = arith.constant 0 : index
    %c128_31 = arith.constant 128 : index
    %41 = vector.load %arg8[%c4_29, %c0_30, %c128_31] : memref<8x8x256xf32, #tpu.memory_space<vmem>>, vector<1x8x128xf32>
    %42 = vector.shape_cast %41 : vector<1x8x128xf32> to vector<8x128xf32>
    %43 = vector.shape_cast %8 : vector<8x128xf32> to vector<1x8x128xf32>
    tpu.vector_store %arg8[%c4_29, %c0_30, %c128_31], %43 {strides = array<i32>} : memref<8x8x256xf32, #tpu.memory_space<vmem>>, vector<1x8x128xf32>,
    %44 = vector.extract_strided_slice %5 {offsets = [40, 0], sizes = [8, 128], strides = [1, 1]} : vector<64x128xf32> to vector<8x128xf32>
    %c5 = arith.constant 5 : index
    %c0_32 = arith.constant 0 : index
    %c0_33 = arith.constant 0 : index
    %45 = vector.load %arg8[%c5, %c0_32, %c0_33] : memref<8x8x256xf32, #tpu.memory_space<vmem>>, vector<1x8x128xf32>
    %46 = vector.shape_cast %45 : vector<1x8x128xf32> to vector<8x128xf32>
    %47 = vector.shape_cast %44 : vector<8x128xf32> to vector<1x8x128xf32>
    tpu.vector_store %arg8[%c5, %c0_32, %c0_33], %47 {strides = array<i32>} : memref<8x8x256xf32, #tpu.memory_space<vmem>>, vector<1x8x128xf32>,
    %c5_34 = arith.constant 5 : index
    %c0_35 = arith.constant 0 : index
    %c128_36 = arith.constant 128 : index
    %48 = vector.load %arg8[%c5_34, %c0_35, %c128_36] : memref<8x8x256xf32, #tpu.memory_space<vmem>>, vector<1x8x128xf32>
    %49 = vector.shape_cast %48 : vector<1x8x128xf32> to vector<8x128xf32>
    %50 = vector.shape_cast %8 : vector<8x128xf32> to vector<1x8x128xf32>
    tpu.vector_store %arg8[%c5_34, %c0_35, %c128_36], %50 {strides = array<i32>} : memref<8x8x256xf32, #tpu.memory_space<vmem>>, vector<1x8x128xf32>,
    %51 = vector.extract_strided_slice %5 {offsets = [48, 0], sizes = [8, 128], strides = [1, 1]} : vector<64x128xf32> to vector<8x128xf32>
    %c6 = arith.constant 6 : index
    %c0_37 = arith.constant 0 : index
    %c0_38 = arith.constant 0 : index
    %52 = vector.load %arg8[%c6, %c0_37, %c0_38] : memref<8x8x256xf32, #tpu.memory_space<vmem>>, vector<1x8x128xf32>
    %53 = vector.shape_cast %52 : vector<1x8x128xf32> to vector<8x128xf32>
    %54 = vector.shape_cast %51 : vector<8x128xf32> to vector<1x8x128xf32>
    tpu.vector_store %arg8[%c6, %c0_37, %c0_38], %54 {strides = array<i32>} : memref<8x8x256xf32, #tpu.memory_space<vmem>>, vector<1x8x128xf32>,
    %c6_39 = arith.constant 6 : index
    %c0_40 = arith.constant 0 : index
    %c128_41 = arith.constant 128 : index
    %55 = vector.load %arg8[%c6_39, %c0_40, %c128_41] : memref<8x8x256xf32, #tpu.memory_space<vmem>>, vector<1x8x128xf32>
    %56 = vector.shape_cast %55 : vector<1x8x128xf32> to vector<8x128xf32>
    %57 = vector.shape_cast %8 : vector<8x128xf32> to vector<1x8x128xf32>
    tpu.vector_store %arg8[%c6_39, %c0_40, %c128_41], %57 {strides = array<i32>} : memref<8x8x256xf32, #tpu.memory_space<vmem>>, vector<1x8x128xf32>,
    %58 = vector.extract_strided_slice %5 {offsets = [56, 0], sizes = [8, 128], strides = [1, 1]} : vector<64x128xf32> to vector<8x128xf32>
    %c7 = arith.constant 7 : index
    %c0_42 = arith.constant 0 : index
    %c0_43 = arith.constant 0 : index
    %59 = vector.load %arg8[%c7, %c0_42, %c0_43] : memref<8x8x256xf32, #tpu.memory_space<vmem>>, vector<1x8x128xf32>
    %60 = vector.shape_cast %59 : vector<1x8x128xf32> to vector<8x128xf32>
    %61 = vector.shape_cast %58 : vector<8x128xf32> to vector<1x8x128xf32>
    tpu.vector_store %arg8[%c7, %c0_42, %c0_43], %61 {strides = array<i32>} : memref<8x8x256xf32, #tpu.memory_space<vmem>>, vector<1x8x128xf32>,
    %c7_44 = arith.constant 7 : index
    %c0_45 = arith.constant 0 : index
    %c128_46 = arith.constant 128 : index
    %62 = vector.load %arg8[%c7_44, %c0_45, %c128_46] : memref<8x8x256xf32, #tpu.memory_space<vmem>>, vector<1x8x128xf32>
    %63 = vector.shape_cast %62 : vector<1x8x128xf32> to vector<8x128xf32>
    %64 = vector.shape_cast %8 : vector<8x128xf32> to vector<1x8x128xf32>
    tpu.vector_store %arg8[%c7_44, %c0_45, %c128_46], %64 {strides = array<i32>} : memref<8x8x256xf32, #tpu.memory_space<vmem>>, vector<1x8x128xf32>,
    %65 = vector.extract_strided_slice %5 {offsets = [0, 0], sizes = [8, 128], strides = [1, 1]} : vector<64x128xf32> to vector<8x128xf32>
    %66 = math.tanh %65 : vector<8x128xf32>
    %cst_47 = arith.constant 0.000000e+00 : f32
    %67 = vector.broadcast %cst_47 : f32 to vector<8x128xf32>
    %68 = tpu.concatenate %66, %67 in 1 : vector<8x128xf32>, vector<8x128xf32> -> vector<8x256xf32>
    %c1_i32 = arith.constant 1 : i32
    %69 = arith.truncf %68 : vector<8x256xf32> to vector<8x256xbf16>
    %c0_48 = arith.constant 0 : index
    %c0_49 = arith.constant 0 : index
    %70 = vector.load %arg3[%c0_48, %c0_49] : memref<256x256xbf16, #tpu.memory_space<vmem>>, vector<256x256xbf16>
    %cst_50 = arith.constant dense<0.000000e+00> : vector<8x256xf32>
    %71 = tpu.matmul %69, %70, %cst_50 {dimension_numbers = #tpu.dot_dimension_numbers<[1], [0], [0], [1], [0, 0, 1, 1], [], []>} : vector<8x256xbf16>, vector<256x256xbf16>, vector<8x256xf32> -> vector<8x256xf32>
    %c7_i32 = arith.constant 7 : i32
    %72 = arith.minsi %c1_i32, %c7_i32 : i32
    %73 = arith.index_cast %72 : i32 to index
    %c0_51 = arith.constant 0 : index
    %c0_52 = arith.constant 0 : index
    %74 = vector.load %arg8[%73, %c0_51, %c0_52] : memref<8x8x256xf32, #tpu.memory_space<vmem>>, vector<1x8x256xf32>
    %75 = vector.shape_cast %74 : vector<1x8x256xf32> to vector<8x256xf32>
    %76 = arith.addf %71, %75 : vector<8x256xf32>
    %77 = math.tanh %76 : vector<8x256xf32>
    %78 = vector.extract_strided_slice %77 {offsets = [0, 128], sizes = [8, 128], strides = [1, 1]} : vector<8x256xf32> to vector<8x128xf32>
    %c1_i32_53 = arith.constant 1 : i32
    %79 = arith.subi %c1_i32, %c1_i32_53 : i32
    %80 = arith.index_cast %79 : i32 to index
    %c0_54 = arith.constant 0 : index
    %c0_55 = arith.constant 0 : index
    %81 = vector.load %arg9[%80, %c0_54, %c0_55] : memref<8x8x128xf32, #tpu.memory_space<vmem>>, vector<1x8x128xf32>
    %82 = vector.shape_cast %81 : vector<1x8x128xf32> to vector<8x128xf32>
    %83 = vector.shape_cast %78 : vector<8x128xf32> to vector<1x8x128xf32>
    tpu.vector_store %arg9[%80, %c0_54, %c0_55], %83 {strides = array<i32>} : memref<8x8x128xf32, #tpu.memory_space<vmem>>, vector<1x8x128xf32>,
    %c2_i32 = arith.constant 2 : i32
    %84 = arith.truncf %77 : vector<8x256xf32> to vector<8x256xbf16>
    %c0_56 = arith.constant 0 : index
    %c0_57 = arith.constant 0 : index
    %85 = vector.load %arg3[%c0_56, %c0_57] : memref<256x256xbf16, #tpu.memory_space<vmem>>, vector<256x256xbf16>
    %cst_58 = arith.constant dense<0.000000e+00> : vector<8x256xf32>
    %86 = tpu.matmul %84, %85, %cst_58 {dimension_numbers = #tpu.dot_dimension_numbers<[1], [0], [0], [1], [0, 0, 1, 1], [], []>} : vector<8x256xbf16>, vector<256x256xbf16>, vector<8x256xf32> -> vector<8x256xf32>
    %c7_i32_59 = arith.constant 7 : i32
    %87 = arith.minsi %c2_i32, %c7_i32_59 : i32
    %88 = arith.index_cast %87 : i32 to index
    %c0_60 = arith.constant 0 : index
    %c0_61 = arith.constant 0 : index
    %89 = vector.load %arg8[%88, %c0_60, %c0_61] : memref<8x8x256xf32, #tpu.memory_space<vmem>>, vector<1x8x256xf32>
    %90 = vector.shape_cast %89 : vector<1x8x256xf32> to vector<8x256xf32>
    %91 = arith.addf %86, %90 : vector<8x256xf32>
    %92 = math.tanh %91 : vector<8x256xf32>
    %93 = vector.extract_strided_slice %92 {offsets = [0, 128], sizes = [8, 128], strides = [1, 1]} : vector<8x256xf32> to vector<8x128xf32>
    %c1_i32_62 = arith.constant 1 : i32
    %94 = arith.subi %c2_i32, %c1_i32_62 : i32
    %95 = arith.index_cast %94 : i32 to index
    %c0_63 = arith.constant 0 : index
    %c0_64 = arith.constant 0 : index
    %96 = vector.load %arg9[%95, %c0_63, %c0_64] : memref<8x8x128xf32, #tpu.memory_space<vmem>>, vector<1x8x128xf32>
    %97 = vector.shape_cast %96 : vector<1x8x128xf32> to vector<8x128xf32>
    %98 = vector.shape_cast %93 : vector<8x128xf32> to vector<1x8x128xf32>
    tpu.vector_store %arg9[%95, %c0_63, %c0_64], %98 {strides = array<i32>} : memref<8x8x128xf32, #tpu.memory_space<vmem>>, vector<1x8x128xf32>,
    %c3_i32 = arith.constant 3 : i32
    %99 = arith.truncf %92 : vector<8x256xf32> to vector<8x256xbf16>
    %c0_65 = arith.constant 0 : index
    %c0_66 = arith.constant 0 : index
    %100 = vector.load %arg3[%c0_65, %c0_66] : memref<256x256xbf16, #tpu.memory_space<vmem>>, vector<256x256xbf16>
    %cst_67 = arith.constant dense<0.000000e+00> : vector<8x256xf32>
    %101 = tpu.matmul %99, %100, %cst_67 {dimension_numbers = #tpu.dot_dimension_numbers<[1], [0], [0], [1], [0, 0, 1, 1], [], []>} : vector<8x256xbf16>, vector<256x256xbf16>, vector<8x256xf32> -> vector<8x256xf32>
    %c7_i32_68 = arith.constant 7 : i32
    %102 = arith.minsi %c3_i32, %c7_i32_68 : i32
    %103 = arith.index_cast %102 : i32 to index
    %c0_69 = arith.constant 0 : index
    %c0_70 = arith.constant 0 : index
    %104 = vector.load %arg8[%103, %c0_69, %c0_70] : memref<8x8x256xf32, #tpu.memory_space<vmem>>, vector<1x8x256xf32>
    %105 = vector.shape_cast %104 : vector<1x8x256xf32> to vector<8x256xf32>
    %106 = arith.addf %101, %105 : vector<8x256xf32>
    %107 = math.tanh %106 : vector<8x256xf32>
    %108 = vector.extract_strided_slice %107 {offsets = [0, 128], sizes = [8, 128], strides = [1, 1]} : vector<8x256xf32> to vector<8x128xf32>
    %c1_i32_71 = arith.constant 1 : i32
    %109 = arith.subi %c3_i32, %c1_i32_71 : i32
    %110 = arith.index_cast %109 : i32 to index
    %c0_72 = arith.constant 0 : index
    %c0_73 = arith.constant 0 : index
    %111 = vector.load %arg9[%110, %c0_72, %c0_73] : memref<8x8x128xf32, #tpu.memory_space<vmem>>, vector<1x8x128xf32>
    %112 = vector.shape_cast %111 : vector<1x8x128xf32> to vector<8x128xf32>
    %113 = vector.shape_cast %108 : vector<8x128xf32> to vector<1x8x128xf32>
    tpu.vector_store %arg9[%110, %c0_72, %c0_73], %113 {strides = array<i32>} : memref<8x8x128xf32, #tpu.memory_space<vmem>>, vector<1x8x128xf32>,
    %c4_i32 = arith.constant 4 : i32
    %114 = arith.truncf %107 : vector<8x256xf32> to vector<8x256xbf16>
    %c0_74 = arith.constant 0 : index
    %c0_75 = arith.constant 0 : index
    %115 = vector.load %arg3[%c0_74, %c0_75] : memref<256x256xbf16, #tpu.memory_space<vmem>>, vector<256x256xbf16>
    %cst_76 = arith.constant dense<0.000000e+00> : vector<8x256xf32>
    %116 = tpu.matmul %114, %115, %cst_76 {dimension_numbers = #tpu.dot_dimension_numbers<[1], [0], [0], [1], [0, 0, 1, 1], [], []>} : vector<8x256xbf16>, vector<256x256xbf16>, vector<8x256xf32> -> vector<8x256xf32>
    %c7_i32_77 = arith.constant 7 : i32
    %117 = arith.minsi %c4_i32, %c7_i32_77 : i32
    %118 = arith.index_cast %117 : i32 to index
    %c0_78 = arith.constant 0 : index
    %c0_79 = arith.constant 0 : index
    %119 = vector.load %arg8[%118, %c0_78, %c0_79] : memref<8x8x256xf32, #tpu.memory_space<vmem>>, vector<1x8x256xf32>
    %120 = vector.shape_cast %119 : vector<1x8x256xf32> to vector<8x256xf32>
    %121 = arith.addf %116, %120 : vector<8x256xf32>
    %122 = math.tanh %121 : vector<8x256xf32>
    %123 = vector.extract_strided_slice %122 {offsets = [0, 128], sizes = [8, 128], strides = [1, 1]} : vector<8x256xf32> to vector<8x128xf32>
    %c1_i32_80 = arith.constant 1 : i32
    %124 = arith.subi %c4_i32, %c1_i32_80 : i32
    %125 = arith.index_cast %124 : i32 to index
    %c0_81 = arith.constant 0 : index
    %c0_82 = arith.constant 0 : index
    %126 = vector.load %arg9[%125, %c0_81, %c0_82] : memref<8x8x128xf32, #tpu.memory_space<vmem>>, vector<1x8x128xf32>
    %127 = vector.shape_cast %126 : vector<1x8x128xf32> to vector<8x128xf32>
    %128 = vector.shape_cast %123 : vector<8x128xf32> to vector<1x8x128xf32>
    tpu.vector_store %arg9[%125, %c0_81, %c0_82], %128 {strides = array<i32>} : memref<8x8x128xf32, #tpu.memory_space<vmem>>, vector<1x8x128xf32>,
    %c5_i32 = arith.constant 5 : i32
    %129 = arith.truncf %122 : vector<8x256xf32> to vector<8x256xbf16>
    %c0_83 = arith.constant 0 : index
    %c0_84 = arith.constant 0 : index
    %130 = vector.load %arg3[%c0_83, %c0_84] : memref<256x256xbf16, #tpu.memory_space<vmem>>, vector<256x256xbf16>
    %cst_85 = arith.constant dense<0.000000e+00> : vector<8x256xf32>
    %131 = tpu.matmul %129, %130, %cst_85 {dimension_numbers = #tpu.dot_dimension_numbers<[1], [0], [0], [1], [0, 0, 1, 1], [], []>} : vector<8x256xbf16>, vector<256x256xbf16>, vector<8x256xf32> -> vector<8x256xf32>
    %c7_i32_86 = arith.constant 7 : i32
    %132 = arith.minsi %c5_i32, %c7_i32_86 : i32
    %133 = arith.index_cast %132 : i32 to index
    %c0_87 = arith.constant 0 : index
    %c0_88 = arith.constant 0 : index
    %134 = vector.load %arg8[%133, %c0_87, %c0_88] : memref<8x8x256xf32, #tpu.memory_space<vmem>>, vector<1x8x256xf32>
    %135 = vector.shape_cast %134 : vector<1x8x256xf32> to vector<8x256xf32>
    %136 = arith.addf %131, %135 : vector<8x256xf32>
    %137 = math.tanh %136 : vector<8x256xf32>
    %138 = vector.extract_strided_slice %137 {offsets = [0, 128], sizes = [8, 128], strides = [1, 1]} : vector<8x256xf32> to vector<8x128xf32>
    %c1_i32_89 = arith.constant 1 : i32
    %139 = arith.subi %c5_i32, %c1_i32_89 : i32
    %140 = arith.index_cast %139 : i32 to index
    %c0_90 = arith.constant 0 : index
    %c0_91 = arith.constant 0 : index
    %141 = vector.load %arg9[%140, %c0_90, %c0_91] : memref<8x8x128xf32, #tpu.memory_space<vmem>>, vector<1x8x128xf32>
    %142 = vector.shape_cast %141 : vector<1x8x128xf32> to vector<8x128xf32>
    %143 = vector.shape_cast %138 : vector<8x128xf32> to vector<1x8x128xf32>
    tpu.vector_store %arg9[%140, %c0_90, %c0_91], %143 {strides = array<i32>} : memref<8x8x128xf32, #tpu.memory_space<vmem>>, vector<1x8x128xf32>,
    %c6_i32 = arith.constant 6 : i32
    %144 = arith.truncf %137 : vector<8x256xf32> to vector<8x256xbf16>
    %c0_92 = arith.constant 0 : index
    %c0_93 = arith.constant 0 : index
    %145 = vector.load %arg3[%c0_92, %c0_93] : memref<256x256xbf16, #tpu.memory_space<vmem>>, vector<256x256xbf16>
    %cst_94 = arith.constant dense<0.000000e+00> : vector<8x256xf32>
    %146 = tpu.matmul %144, %145, %cst_94 {dimension_numbers = #tpu.dot_dimension_numbers<[1], [0], [0], [1], [0, 0, 1, 1], [], []>} : vector<8x256xbf16>, vector<256x256xbf16>, vector<8x256xf32> -> vector<8x256xf32>
    %c7_i32_95 = arith.constant 7 : i32
    %147 = arith.minsi %c6_i32, %c7_i32_95 : i32
    %148 = arith.index_cast %147 : i32 to index
    %c0_96 = arith.constant 0 : index
    %c0_97 = arith.constant 0 : index
    %149 = vector.load %arg8[%148, %c0_96, %c0_97] : memref<8x8x256xf32, #tpu.memory_space<vmem>>, vector<1x8x256xf32>
    %150 = vector.shape_cast %149 : vector<1x8x256xf32> to vector<8x256xf32>
    %151 = arith.addf %146, %150 : vector<8x256xf32>
    %152 = math.tanh %151 : vector<8x256xf32>
    %153 = vector.extract_strided_slice %152 {offsets = [0, 128], sizes = [8, 128], strides = [1, 1]} : vector<8x256xf32> to vector<8x128xf32>
    %c1_i32_98 = arith.constant 1 : i32
    %154 = arith.subi %c6_i32, %c1_i32_98 : i32
    %155 = arith.index_cast %154 : i32 to index
    %c0_99 = arith.constant 0 : index
    %c0_100 = arith.constant 0 : index
    %156 = vector.load %arg9[%155, %c0_99, %c0_100] : memref<8x8x128xf32, #tpu.memory_space<vmem>>, vector<1x8x128xf32>
    %157 = vector.shape_cast %156 : vector<1x8x128xf32> to vector<8x128xf32>
    %158 = vector.shape_cast %153 : vector<8x128xf32> to vector<1x8x128xf32>
    tpu.vector_store %arg9[%155, %c0_99, %c0_100], %158 {strides = array<i32>} : memref<8x8x128xf32, #tpu.memory_space<vmem>>, vector<1x8x128xf32>,
    %c7_i32_101 = arith.constant 7 : i32
    %159 = arith.truncf %152 : vector<8x256xf32> to vector<8x256xbf16>
    %c0_102 = arith.constant 0 : index
    %c0_103 = arith.constant 0 : index
    %160 = vector.load %arg3[%c0_102, %c0_103] : memref<256x256xbf16, #tpu.memory_space<vmem>>, vector<256x256xbf16>
    %cst_104 = arith.constant dense<0.000000e+00> : vector<8x256xf32>
    %161 = tpu.matmul %159, %160, %cst_104 {dimension_numbers = #tpu.dot_dimension_numbers<[1], [0], [0], [1], [0, 0, 1, 1], [], []>} : vector<8x256xbf16>, vector<256x256xbf16>, vector<8x256xf32> -> vector<8x256xf32>
    %c7_i32_105 = arith.constant 7 : i32
    %162 = arith.minsi %c7_i32_101, %c7_i32_105 : i32
    %163 = arith.index_cast %162 : i32 to index
    %c0_106 = arith.constant 0 : index
    %c0_107 = arith.constant 0 : index
    %164 = vector.load %arg8[%163, %c0_106, %c0_107] : memref<8x8x256xf32, #tpu.memory_space<vmem>>, vector<1x8x256xf32>
    %165 = vector.shape_cast %164 : vector<1x8x256xf32> to vector<8x256xf32>
    %166 = arith.addf %161, %165 : vector<8x256xf32>
    %167 = math.tanh %166 : vector<8x256xf32>
    %168 = vector.extract_strided_slice %167 {offsets = [0, 128], sizes = [8, 128], strides = [1, 1]} : vector<8x256xf32> to vector<8x128xf32>
    %c1_i32_108 = arith.constant 1 : i32
    %169 = arith.subi %c7_i32_101, %c1_i32_108 : i32
    %170 = arith.index_cast %169 : i32 to index
    %c0_109 = arith.constant 0 : index
    %c0_110 = arith.constant 0 : index
    %171 = vector.load %arg9[%170, %c0_109, %c0_110] : memref<8x8x128xf32, #tpu.memory_space<vmem>>, vector<1x8x128xf32>
    %172 = vector.shape_cast %171 : vector<1x8x128xf32> to vector<8x128xf32>
    %173 = vector.shape_cast %168 : vector<8x128xf32> to vector<1x8x128xf32>
    tpu.vector_store %arg9[%170, %c0_109, %c0_110], %173 {strides = array<i32>} : memref<8x8x128xf32, #tpu.memory_space<vmem>>, vector<1x8x128xf32>,
    %c8_i32 = arith.constant 8 : i32
    %174 = arith.truncf %167 : vector<8x256xf32> to vector<8x256xbf16>
    %c0_111 = arith.constant 0 : index
    %c0_112 = arith.constant 0 : index
    %175 = vector.load %arg3[%c0_111, %c0_112] : memref<256x256xbf16, #tpu.memory_space<vmem>>, vector<256x256xbf16>
    %cst_113 = arith.constant dense<0.000000e+00> : vector<8x256xf32>
    %176 = tpu.matmul %174, %175, %cst_113 {dimension_numbers = #tpu.dot_dimension_numbers<[1], [0], [0], [1], [0, 0, 1, 1], [], []>} : vector<8x256xbf16>, vector<256x256xbf16>, vector<8x256xf32> -> vector<8x256xf32>
    %c7_i32_114 = arith.constant 7 : i32
    %177 = arith.minsi %c8_i32, %c7_i32_114 : i32
    %178 = arith.index_cast %177 : i32 to index
    %c0_115 = arith.constant 0 : index
    %c0_116 = arith.constant 0 : index
    %179 = vector.load %arg8[%178, %c0_115, %c0_116] : memref<8x8x256xf32, #tpu.memory_space<vmem>>, vector<1x8x256xf32>
    %180 = vector.shape_cast %179 : vector<1x8x256xf32> to vector<8x256xf32>
    %181 = arith.addf %176, %180 : vector<8x256xf32>
    %182 = math.tanh %181 : vector<8x256xf32>
    %183 = vector.extract_strided_slice %182 {offsets = [0, 128], sizes = [8, 128], strides = [1, 1]} : vector<8x256xf32> to vector<8x128xf32>
    %c1_i32_117 = arith.constant 1 : i32
    %184 = arith.subi %c8_i32, %c1_i32_117 : i32
    %185 = arith.index_cast %184 : i32 to index
    %c0_118 = arith.constant 0 : index
    %c0_119 = arith.constant 0 : index
    %186 = vector.load %arg9[%185, %c0_118, %c0_119] : memref<8x8x128xf32, #tpu.memory_space<vmem>>, vector<1x8x128xf32>
    %187 = vector.shape_cast %186 : vector<1x8x128xf32> to vector<8x128xf32>
    %188 = vector.shape_cast %183 : vector<8x128xf32> to vector<1x8x128xf32>
    tpu.vector_store %arg9[%185, %c0_118, %c0_119], %188 {strides = array<i32>} : memref<8x8x128xf32, #tpu.memory_space<vmem>>, vector<1x8x128xf32>,
    %c8_i32_120 = arith.constant 8 : i32
    %cst_121 = arith.constant 0.000000e+00 : f32
    %189 = vector.broadcast %cst_121 : f32 to vector<8x128xf32>
    %c0_i32 = arith.constant 0 : i32
    %190 = arith.index_cast %c0_i32 : i32 to index
    %c0_122 = arith.constant 0 : index
    %c0_123 = arith.constant 0 : index
    %191 = vector.load %arg9[%190, %c0_122, %c0_123] : memref<8x8x128xf32, #tpu.memory_space<vmem>>, vector<1x8x128xf32>
    %192 = vector.shape_cast %191 : vector<1x8x128xf32> to vector<8x128xf32>
    %193 = arith.truncf %192 : vector<8x128xf32> to vector<8x128xbf16>
    %194 = arith.index_cast %c0_i32 : i32 to index
    %c0_124 = arith.constant 0 : index
    %c0_125 = arith.constant 0 : index
    %195 = vector.load %arg5[%194, %c0_124, %c0_125] : memref<8x128x128xbf16, #tpu.memory_space<vmem>>, vector<1x128x128xbf16>
    %196 = vector.shape_cast %195 : vector<1x128x128xbf16> to vector<128x128xbf16>
    %cst_126 = arith.constant dense<0.000000e+00> : vector<8x128xf32>
    %197 = tpu.matmul %193, %196, %cst_126 {dimension_numbers = #tpu.dot_dimension_numbers<[1], [0], [0], [1], [0, 0, 1, 1], [], []>} : vector<8x128xbf16>, vector<128x128xbf16>, vector<8x128xf32> -> vector<8x128xf32>
    %198 = arith.addf %189, %197 : vector<8x128xf32>
    %c1_i32_127 = arith.constant 1 : i32
    %199 = arith.index_cast %c1_i32_127 : i32 to index
    %c0_128 = arith.constant 0 : index
    %c0_129 = arith.constant 0 : index
    %200 = vector.load %arg9[%199, %c0_128, %c0_129] : memref<8x8x128xf32, #tpu.memory_space<vmem>>, vector<1x8x128xf32>
    %201 = vector.shape_cast %200 : vector<1x8x128xf32> to vector<8x128xf32>
    %202 = arith.truncf %201 : vector<8x128xf32> to vector<8x128xbf16>
    %203 = arith.index_cast %c1_i32_127 : i32 to index
    %c0_130 = arith.constant 0 : index
    %c0_131 = arith.constant 0 : index
    %204 = vector.load %arg5[%203, %c0_130, %c0_131] : memref<8x128x128xbf16, #tpu.memory_space<vmem>>, vector<1x128x128xbf16>
    %205 = vector.shape_cast %204 : vector<1x128x128xbf16> to vector<128x128xbf16>
    %cst_132 = arith.constant dense<0.000000e+00> : vector<8x128xf32>
    %206 = tpu.matmul %202, %205, %cst_132 {dimension_numbers = #tpu.dot_dimension_numbers<[1], [0], [0], [1], [0, 0, 1, 1], [], []>} : vector<8x128xbf16>, vector<128x128xbf16>, vector<8x128xf32> -> vector<8x128xf32>
    %207 = arith.addf %198, %206 : vector<8x128xf32>
    %c2_i32_133 = arith.constant 2 : i32
    %208 = arith.index_cast %c2_i32_133 : i32 to index
    %c0_134 = arith.constant 0 : index
    %c0_135 = arith.constant 0 : index
    %209 = vector.load %arg9[%208, %c0_134, %c0_135] : memref<8x8x128xf32, #tpu.memory_space<vmem>>, vector<1x8x128xf32>
    %210 = vector.shape_cast %209 : vector<1x8x128xf32> to vector<8x128xf32>
    %211 = arith.truncf %210 : vector<8x128xf32> to vector<8x128xbf16>
    %212 = arith.index_cast %c2_i32_133 : i32 to index
    %c0_136 = arith.constant 0 : index
    %c0_137 = arith.constant 0 : index
    %213 = vector.load %arg5[%212, %c0_136, %c0_137] : memref<8x128x128xbf16, #tpu.memory_space<vmem>>, vector<1x128x128xbf16>
    %214 = vector.shape_cast %213 : vector<1x128x128xbf16> to vector<128x128xbf16>
    %cst_138 = arith.constant dense<0.000000e+00> : vector<8x128xf32>
    %215 = tpu.matmul %211, %214, %cst_138 {dimension_numbers = #tpu.dot_dimension_numbers<[1], [0], [0], [1], [0, 0, 1, 1], [], []>} : vector<8x128xbf16>, vector<128x128xbf16>, vector<8x128xf32> -> vector<8x128xf32>
    %216 = arith.addf %207, %215 : vector<8x128xf32>
    %c3_i32_139 = arith.constant 3 : i32
    %217 = arith.index_cast %c3_i32_139 : i32 to index
    %c0_140 = arith.constant 0 : index
    %c0_141 = arith.constant 0 : index
    %218 = vector.load %arg9[%217, %c0_140, %c0_141] : memref<8x8x128xf32, #tpu.memory_space<vmem>>, vector<1x8x128xf32>
    %219 = vector.shape_cast %218 : vector<1x8x128xf32> to vector<8x128xf32>
    %220 = arith.truncf %219 : vector<8x128xf32> to vector<8x128xbf16>
    %221 = arith.index_cast %c3_i32_139 : i32 to index
    %c0_142 = arith.constant 0 : index
    %c0_143 = arith.constant 0 : index
    %222 = vector.load %arg5[%221, %c0_142, %c0_143] : memref<8x128x128xbf16, #tpu.memory_space<vmem>>, vector<1x128x128xbf16>
    %223 = vector.shape_cast %222 : vector<1x128x128xbf16> to vector<128x128xbf16>
    %cst_144 = arith.constant dense<0.000000e+00> : vector<8x128xf32>
    %224 = tpu.matmul %220, %223, %cst_144 {dimension_numbers = #tpu.dot_dimension_numbers<[1], [0], [0], [1], [0, 0, 1, 1], [], []>} : vector<8x128xbf16>, vector<128x128xbf16>, vector<8x128xf32> -> vector<8x128xf32>
    %225 = arith.addf %216, %224 : vector<8x128xf32>
    %c4_i32_145 = arith.constant 4 : i32
    %226 = arith.index_cast %c4_i32_145 : i32 to index
    %c0_146 = arith.constant 0 : index
    %c0_147 = arith.constant 0 : index
    %227 = vector.load %arg9[%226, %c0_146, %c0_147] : memref<8x8x128xf32, #tpu.memory_space<vmem>>, vector<1x8x128xf32>
    %228 = vector.shape_cast %227 : vector<1x8x128xf32> to vector<8x128xf32>
    %229 = arith.truncf %228 : vector<8x128xf32> to vector<8x128xbf16>
    %230 = arith.index_cast %c4_i32_145 : i32 to index
    %c0_148 = arith.constant 0 : index
    %c0_149 = arith.constant 0 : index
    %231 = vector.load %arg5[%230, %c0_148, %c0_149] : memref<8x128x128xbf16, #tpu.memory_space<vmem>>, vector<1x128x128xbf16>
    %232 = vector.shape_cast %231 : vector<1x128x128xbf16> to vector<128x128xbf16>
    %cst_150 = arith.constant dense<0.000000e+00> : vector<8x128xf32>
    %233 = tpu.matmul %229, %232, %cst_150 {dimension_numbers = #tpu.dot_dimension_numbers<[1], [0], [0], [1], [0, 0, 1, 1], [], []>} : vector<8x128xbf16>, vector<128x128xbf16>, vector<8x128xf32> -> vector<8x128xf32>
    %234 = arith.addf %225, %233 : vector<8x128xf32>
    %c5_i32_151 = arith.constant 5 : i32
    %235 = arith.index_cast %c5_i32_151 : i32 to index
    %c0_152 = arith.constant 0 : index
    %c0_153 = arith.constant 0 : index
    %236 = vector.load %arg9[%235, %c0_152, %c0_153] : memref<8x8x128xf32, #tpu.memory_space<vmem>>, vector<1x8x128xf32>
    %237 = vector.shape_cast %236 : vector<1x8x128xf32> to vector<8x128xf32>
    %238 = arith.truncf %237 : vector<8x128xf32> to vector<8x128xbf16>
    %239 = arith.index_cast %c5_i32_151 : i32 to index
    %c0_154 = arith.constant 0 : index
    %c0_155 = arith.constant 0 : index
    %240 = vector.load %arg5[%239, %c0_154, %c0_155] : memref<8x128x128xbf16, #tpu.memory_space<vmem>>, vector<1x128x128xbf16>
    %241 = vector.shape_cast %240 : vector<1x128x128xbf16> to vector<128x128xbf16>
    %cst_156 = arith.constant dense<0.000000e+00> : vector<8x128xf32>
    %242 = tpu.matmul %238, %241, %cst_156 {dimension_numbers = #tpu.dot_dimension_numbers<[1], [0], [0], [1], [0, 0, 1, 1], [], []>} : vector<8x128xbf16>, vector<128x128xbf16>, vector<8x128xf32> -> vector<8x128xf32>
    %243 = arith.addf %234, %242 : vector<8x128xf32>
    %c6_i32_157 = arith.constant 6 : i32
    %244 = arith.index_cast %c6_i32_157 : i32 to index
    %c0_158 = arith.constant 0 : index
    %c0_159 = arith.constant 0 : index
    %245 = vector.load %arg9[%244, %c0_158, %c0_159] : memref<8x8x128xf32, #tpu.memory_space<vmem>>, vector<1x8x128xf32>
    %246 = vector.shape_cast %245 : vector<1x8x128xf32> to vector<8x128xf32>
    %247 = arith.truncf %246 : vector<8x128xf32> to vector<8x128xbf16>
    %248 = arith.index_cast %c6_i32_157 : i32 to index
    %c0_160 = arith.constant 0 : index
    %c0_161 = arith.constant 0 : index
    %249 = vector.load %arg5[%248, %c0_160, %c0_161] : memref<8x128x128xbf16, #tpu.memory_space<vmem>>, vector<1x128x128xbf16>
    %250 = vector.shape_cast %249 : vector<1x128x128xbf16> to vector<128x128xbf16>
    %cst_162 = arith.constant dense<0.000000e+00> : vector<8x128xf32>
    %251 = tpu.matmul %247, %250, %cst_162 {dimension_numbers = #tpu.dot_dimension_numbers<[1], [0], [0], [1], [0, 0, 1, 1], [], []>} : vector<8x128xbf16>, vector<128x128xbf16>, vector<8x128xf32> -> vector<8x128xf32>
    %252 = arith.addf %243, %251 : vector<8x128xf32>
    %c7_i32_163 = arith.constant 7 : i32
    %253 = arith.index_cast %c7_i32_163 : i32 to index
    %c0_164 = arith.constant 0 : index
    %c0_165 = arith.constant 0 : index
    %254 = vector.load %arg9[%253, %c0_164, %c0_165] : memref<8x8x128xf32, #tpu.memory_space<vmem>>, vector<1x8x128xf32>
    %255 = vector.shape_cast %254 : vector<1x8x128xf32> to vector<8x128xf32>
    %256 = arith.truncf %255 : vector<8x128xf32> to vector<8x128xbf16>
    %257 = arith.index_cast %c7_i32_163 : i32 to index
    %c0_166 = arith.constant 0 : index
    %c0_167 = arith.constant 0 : index
    %258 = vector.load %arg5[%257, %c0_166, %c0_167] : memref<8x128x128xbf16, #tpu.memory_space<vmem>>, vector<1x128x128xbf16>
    %259 = vector.shape_cast %258 : vector<1x128x128xbf16> to vector<128x128xbf16>
    %cst_168 = arith.constant dense<0.000000e+00> : vector<8x128xf32>
    %260 = tpu.matmul %256, %259, %cst_168 {dimension_numbers = #tpu.dot_dimension_numbers<[1], [0], [0], [1], [0, 0, 1, 1], [], []>} : vector<8x128xbf16>, vector<128x128xbf16>, vector<8x128xf32> -> vector<8x128xf32>
    %261 = arith.addf %252, %260 : vector<8x128xf32>
    %c8_i32_169 = arith.constant 8 : i32
    %c0_170 = arith.constant 0 : index
    %c0_171 = arith.constant 0 : index
    %262 = vector.load %arg6[%c0_170, %c0_171] : memref<1x128xf32, #tpu.memory_space<vmem>>, vector<1x128xf32>
    %263 = vector.broadcast %262 : vector<1x128xf32> to vector<8x128xf32>
    %264 = arith.addf %261, %263 : vector<8x128xf32>
    %c0_172 = arith.constant 0 : index
    %c0_173 = arith.constant 0 : index
    %265 = vector.load %arg7[%c0_172, %c0_173] : memref<8x128xf32, #tpu.memory_space<vmem>>, vector<8x128xf32>
    tpu.vector_store %arg7[%c0_172, %c0_173], %264 {strides = array<i32>} : memref<8x128xf32, #tpu.memory_space<vmem>>, vector<8x128xf32>,
    return
  }
}

</mosaic_0001>

<bundles_post_ra>
// kernel: rnn_forward.1
= control target key start
LH: loop header
LB: loop body
LE: loop exit
PB: predicated region body
PF: predicated region fallthrough
CT: control target
= control target key end

     0   :  { %v3948_v42 = vmov 0.0|0.0   ;;  %vm3950_vm0 = vmmov 0   ;;  %s4925_s1 = inlined_call_operand.vmem [shape: bf16[128,128], index: 1, kind: input, shape index: {}]   ;;  %s4926_s0 = inlined_call_operand.vmem [shape: bf16[64,128], index: 0, kind: input, shape index: {}]   ;;  %s4927_s3 = inlined_call_operand.vmem [shape: bf16[256,256], index: 3, kind: input, shape index: {}]   ;;  %s4928_s2 = inlined_call_operand.vmem [shape: f32[1,128], index: 2, kind: input, shape index: {}]   ;;  %s4929_s4 = inlined_call_operand.vmem [shape: f32[1,128], index: 4, kind: input, shape index: {}]   ;;  %s4930_s5 = inlined_call_operand.vmem [shape: bf16[8,128,128], index: 5, kind: input, shape index: {}]   ;;  %s4931_s6 = inlined_call_operand.vmem [shape: f32[1,128], index: 6, kind: input, shape index: {}]   ;;  %s4932_s7 = inlined_call_operand.vmem [shape: f32[8,128], index: 7, kind: output, shape index: {}]  }
   0x1   :  { %v3742_v0 = vld [vmem:[%s4925_s1] sm:$0xff]   ;;  %v3743_v1 = vld [vmem:[%s4925_s1 + $0x8] sm:$0xff]   ;;  %v3744_v2 = vld [vmem:[%s4925_s1 + $0x10] sm:$0xff]   ;;  %454 = vmatprep.mubr.bf16.mxu1 %v3948_v42 }
   0x2   :  { %3555 = vmatprep.subr.bf16.mxu0 %v3742_v0  ;;  %v3745_v3 = vld [vmem:[%s4925_s1 + $0x18] sm:$0xff]   ;;  %v3750_v4 = vld [vmem:[%s4926_s0] sm:$0xff]   ;;  %v3747_v11 = vld [vmem:[%s4925_s1 + $0x28] sm:$0xff]  }
   0x3   :  { %3556 = vmatpush3.bf16.msra.mxu0 %v3742_v0  ;;  %3571 = vmatprep.mubr.bf16.mxu0 %v3750_v4  ;;  %v4009_v5 = vld [vmem:[%s4927_s3 + $0x4] ss:$8 sps:$4 sm:$0xff]   ;;  %v4014_v6 = vld [vmem:[%s4927_s3] ss:$8 sps:$4 sm:$0xff]   ;;  %v4023_v8 = vld [vmem:[%s4927_s3 + $0x14] ss:$8 sps:$4 sm:$0xff]  }
   0x4   :  { %3557 = vmatprep.subr.bf16.mxu0 %v3743_v1  ;;  %v3746_v7 = vld [vmem:[%s4925_s1 + $0x20] sm:$0xff]   ;;  %422 = vmatprep.subr.bf16.mxu1 %v4009_v5  ;;  %v4029_v9 = vld [vmem:[%s4927_s3 + $0x10] ss:$8 sps:$4 sm:$0xff]   ;;  %v4050_v13 = vld [vmem:[%s4927_s3 + $0x34] ss:$8 sps:$4 sm:$0xff]  }
   0x5   :  { %423 = vmatpush1.bf16.msra.mxu1 %v4014_v6  ;;  %v4035_v10 = vld [vmem:[%s4927_s3 + $0x24] ss:$8 sps:$4 sm:$0xff]   ;;  %v4044_v12 = vld [vmem:[%s4927_s3 + $0x20] ss:$8 sps:$4 sm:$0xff]   ;;  %v3748_v14 = vld [vmem:[%s4925_s1 + $0x30] sm:$0xff]  }
   0x6   :  { %424 = vmatprep.subr.bf16.mxu1 %v4023_v8  ;;  %v4059_v15 = vld [vmem:[%s4927_s3 + $0x30] ss:$8 sps:$4 sm:$0xff]   ;;  %v4065_v16 = vld [vmem:[%s4927_s3 + $0x44] ss:$8 sps:$4 sm:$0xff]   ;;  %v4074_v18 = vld [vmem:[%s4927_s3 + $0x40] ss:$8 sps:$4 sm:$0xff]  }
   0x7   :  { %3558 = vmatpush3.bf16.msra.mxu0 %v3743_v1  ;;  %v3749_v17 = vld [vmem:[%s4925_s1 + $0x38] sm:$0xff]   ;;  %v3751_v21 = vld [vmem:[%s4926_s0 + $0x8] sm:$0xff]   ;;  %v4250_v43 = vld [vmem:[%s4928_s2] ss:$0 sm:$0xff] }
   0x8   :  { %3559 = vmatprep.subr.bf16.mxu0 %v3744_v2  ;;  %v4079_v19 = vld [vmem:[%s4927_s3 + $0x54] ss:$8 sps:$4 sm:$0xff]   ;;  %v4085_v20 = vld [vmem:[%s4927_s3 + $0x50] ss:$8 sps:$4 sm:$0xff]   ;;  %v4093_v22 = vld [vmem:[%s4927_s3 + $0x64] ss:$8 sps:$4 sm:$0xff]  }
   0x9   :  { %425 = vmatpush1.bf16.msra.mxu1 %v4029_v9  ;;  %v4100_v23 = vld [vmem:[%s4927_s3 + $0x60] ss:$8 sps:$4 sm:$0xff]   ;;  %v4105_v24 = vld [vmem:[%s4927_s3 + $0x74] ss:$8 sps:$4 sm:$0xff]   ;;  %v4113_v25 = vld [vmem:[%s4927_s3 + $0x70] ss:$8 sps:$4 sm:$0xff]  }
   0xa   :  { %426 = vmatprep.subr.bf16.mxu1 %v4035_v10  ;;  %v4119_v26 = vld [vmem:[%s4927_s3 + $0x84] ss:$8 sps:$4 sm:$0xff]   ;;  %v4130_v27 = vld [vmem:[%s4927_s3 + $0x80] ss:$8 sps:$4 sm:$0xff]   ;;  %v4136_v28 = vld [vmem:[%s4927_s3 + $0x94] ss:$8 sps:$4 sm:$0xff]  }
   0xb   :  { %3560 = vmatpush3.bf16.msra.mxu0 %v3744_v2  ;;  %v4144_v29 = vld [vmem:[%s4927_s3 + $0x90] ss:$8 sps:$4 sm:$0xff]   ;;  %v4150_v30 = vld [vmem:[%s4927_s3 + $0xa4] ss:$8 sps:$4 sm:$0xff]   ;;  %v4158_v31 = vld [vmem:[%s4927_s3 + $0xa0] ss:$8 sps:$4 sm:$0xff]  }
   0xc   :  { %3561 = vmatprep.subr.bf16.mxu0 %v3745_v3  ;;  %v4164_v32 = vld [vmem:[%s4927_s3 + $0xb4] ss:$8 sps:$4 sm:$0xff]   ;;  %v4172_v33 = vld [vmem:[%s4927_s3 + $0xb0] ss:$8 sps:$4 sm:$0xff]   ;;  %v4192_v34 = vld [vmem:[%s4927_s3 + $0xc4] ss:$8 sps:$4 sm:$0xff]  }
   0xd   :  { %427 = vmatpush1.bf16.msra.mxu1 %v4044_v12  ;;  %v4197_v35 = vld [vmem:[%s4927_s3 + $0xc0] ss:$8 sps:$4 sm:$0xff]   ;;  %v4206_v36 = vld [vmem:[%s4927_s3 + $0xd4] ss:$8 sps:$4 sm:$0xff]   ;;  %v4211_v37 = vld [vmem:[%s4927_s3 + $0xd0] ss:$8 sps:$4 sm:$0xff]  }
   0xe   :  { %428 = vmatprep.subr.bf16.mxu1 %v4050_v13  ;;  %v4220_v38 = vld [vmem:[%s4927_s3 + $0xe4] ss:$8 sps:$4 sm:$0xff]   ;;  %v4225_v39 = vld [vmem:[%s4927_s3 + $0xe0] ss:$8 sps:$4 sm:$0xff]   ;;  %v4234_v40 = vld [vmem:[%s4927_s3 + $0xf4] ss:$8 sps:$4 sm:$0xff]  }
   0xf   :  { %3562 = vmatpush3.bf16.msra.mxu0 %v3745_v3  ;;  %v4239_v41 = vld [vmem:[%s4927_s3 + $0xf0] ss:$8 sps:$4 sm:$0xff]   ;;  %v4299_v54 = vld [vmem:[%s4929_s4] ss:$0 sm:$0xff] }
  0x10   :  { %3563 = vmatprep.subr.bf16.mxu0 %v3746_v7  ;;  %v3800_v51 = vld [vmem:[%s4926_s0 + $0x10] sm:$0xff]   ;;  %v3801_v52 = vld [vmem:[%s4926_s0 + $0x18] sm:$0xff]  }
  0x11   :  { %429 = vmatpush1.bf16.msra.mxu1 %v4059_v15 }
  0x12   :  { %430 = vmatprep.subr.bf16.mxu1 %v4065_v16 }
  0x13   :  { %3564 = vmatpush3.bf16.msra.mxu0 %v3746_v7 }
  0x14   :  { %3565 = vmatprep.subr.bf16.mxu0 %v3747_v11 }
  0x15   :  { %431 = vmatpush1.bf16.msra.mxu1 %v4074_v18 }
  0x16   :  { %432 = vmatprep.subr.bf16.mxu1 %v4079_v19 }
  0x17   :  { %3566 = vmatpush3.bf16.msra.mxu0 %v3747_v11 }
  0x18   :  { %3567 = vmatprep.subr.bf16.mxu0 %v3748_v14 }
  0x19   :  { %433 = vmatpush1.bf16.msra.mxu1 %v4085_v20 }
  0x1a   :  { %434 = vmatprep.subr.bf16.mxu1 %v4093_v22 }
  0x1b   :  { %3568 = vmatpush3.bf16.msra.mxu0 %v3748_v14 }
  0x1c   :  { %3569 = vmatprep.subr.bf16.mxu0 %v3749_v17 }
  0x1d   :  { %435 = vmatpush1.bf16.msra.mxu1 %v4100_v23 }
  0x1e   :  { %436 = vmatprep.subr.bf16.mxu1 %v4105_v24 }
  0x1f   :  { %3570 = vmatpush3.bf16.msra.mxu0 %v3749_v17 }
  0x20   :  { %662 = vmatprep.subr.bf16.mxu0 %v4009_v5 }
  0x21   :  { %437 = vmatpush1.bf16.msra.mxu1 %v4113_v25 }
  0x22   :  { %3572 = vmatmul.mubr.bf16.vlgmr.msra.gmra.mrb[0].mxu0 %v3751_v21  ;;  %438 = vmatprep.subr.bf16.mxu1 %v4119_v26 }
  0x23   :  { %663 = vmatpush1.bf16.msra.mxu0 %v4014_v6  ;;  %3575 = vmatprep.mubr.bf16.mxu0 %v3800_v51  ;;  %v4528_v51 = vld [vmem:[%s4927_s3 + $0xb0] ss:$8 sps:$4 sm:$0xff]  }
  0x24   :  { %664 = vmatprep.subr.bf16.mxu0 %v4023_v8 }
  0x25   :  { %439 = vmatpush1.bf16.msra.mxu1 %v4130_v27 }
  0x26   :  { %440 = vmatprep.subr.bf16.mxu1 %v4136_v28 }
  0x27   :  { %665 = vmatpush1.bf16.msra.mxu0 %v4029_v9 }
  0x28   :  { %666 = vmatprep.subr.bf16.mxu0 %v4035_v10 }
  0x29   :  { %441 = vmatpush1.bf16.msra.mxu1 %v4144_v29 }
  0x2a   :  { %442 = vmatprep.subr.bf16.mxu1 %v4150_v30  ;;  %3576 = vmatmul.mubr.bf16.gmra.mrb[4].mxu0 %v3801_v52 }
  0x2b   :  { %667 = vmatpush1.bf16.msra.mxu0 %v4044_v12 }
  0x2c   :  { %668 = vmatprep.subr.bf16.mxu0 %v4050_v13 }
  0x2d   :  { %443 = vmatpush1.bf16.msra.mxu1 %v4158_v31 }
  0x2e   :  { %444 = vmatprep.subr.bf16.mxu1 %v4164_v32 }
  0x2f   :  { %669 = vmatpush1.bf16.msra.mxu0 %v4059_v15 }
  0x30   :  { %670 = vmatprep.subr.bf16.mxu0 %v4065_v16 }
  0x31   :  { %445 = vmatpush1.bf16.msra.mxu1 %v4172_v33 }
  0x32   :  { %446 = vmatprep.subr.bf16.mxu1 %v4192_v34 }
  0x33   :  { %671 = vmatpush1.bf16.msra.mxu0 %v4074_v18 }
  0x34   :  { %672 = vmatprep.subr.bf16.mxu0 %v4079_v19 }
  0x35   :  { %447 = vmatpush1.bf16.msra.mxu1 %v4197_v35 }
  0x36   :  { %448 = vmatprep.subr.bf16.mxu1 %v4206_v36 }
  0x37   :  { %673 = vmatpush1.bf16.msra.mxu0 %v4085_v20 }
  0x38   :  { %674 = vmatprep.subr.bf16.mxu0 %v4093_v22 }
  0x39   :  { %449 = vmatpush1.bf16.msra.mxu1 %v4211_v37 }
  0x3a   :  { %450 = vmatprep.subr.bf16.mxu1 %v4220_v38 }
  0x3b   :  { %675 = vmatpush1.bf16.msra.mxu0 %v4100_v23 }
  0x3c   :  { %676 = vmatprep.subr.bf16.mxu0 %v4105_v24 }
  0x3d   :  { %451 = vmatpush1.bf16.msra.mxu1 %v4225_v39 }
  0x3e   :  { %452 = vmatprep.subr.bf16.mxu1 %v4234_v40 }
  0x3f   :  { %677 = vmatpush1.bf16.msra.mxu0 %v4113_v25 }
  0x40   :  { %678 = vmatprep.subr.bf16.mxu0 %v4119_v26 }
  0x41   :  { %453 = vmatpush1.bf16.msra.mxu1 %v4239_v41 }
  0x42   :  { %903 = vmatprep.subr.bf16.mxu1 %v4009_v5 }
  0x43   :  { %679 = vmatpush1.bf16.msra.mxu0 %v4130_v27 }
  0x44   :  { %680 = vmatprep.subr.bf16.mxu0 %v4136_v28 }
  0x47   :  { %681 = vmatpush1.bf16.msra.mxu0 %v4144_v29 }
  0x48   :  { %682 = vmatprep.subr.bf16.mxu0 %v4150_v30 }
  0x4b   :  { %683 = vmatpush1.bf16.msra.mxu0 %v4158_v31 }
  0x4c   :  { %684 = vmatprep.subr.bf16.mxu0 %v4164_v32 }
  0x4f   :  { %685 = vmatpush1.bf16.msra.mxu0 %v4172_v33 }
  0x50   :  { %686 = vmatprep.subr.bf16.mxu0 %v4192_v34 }
  0x53   :  { %687 = vmatpush1.bf16.msra.mxu0 %v4197_v35 }
  0x54   :  { %688 = vmatprep.subr.bf16.mxu0 %v4206_v36 }
  0x57   :  { %689 = vmatpush1.bf16.msra.mxu0 %v4211_v37 }
  0x58   :  { %690 = vmatprep.subr.bf16.mxu0 %v4220_v38 }
  0x5b   :  { %691 = vmatpush1.bf16.msra.mxu0 %v4225_v39 }
  0x5c   :  { %692 = vmatprep.subr.bf16.mxu0 %v4234_v40 }
  0x5f   :  { %693 = vmatpush1.bf16.msra.mxu0 %v4239_v41 }
  0x60   :  { %1144 = vmatprep.subr.bf16.mxu0 %v4009_v5 }
  0xf5   :  { %v4252_v44 = vpop.f32.mrb[0].mxu0 }
  0xf6   :  { %v164_v45 = vpop.f32.mrb[1].mxu0 }
  0xf7   :  { %v165_v46 = vadd.f32 %v4250_v43, %v164_v45  ;;  %v4255_v47 = vpop.f32.mrb[2].mxu0 }
  0xf8   :  { %v167_v48 = vpop.f32.mrb[3].mxu0 }
  0xf9   :  { %3914 = vtanh.f32 %v165_v46  ;;  %v168_v53 = vadd.f32 %v4250_v43, %v167_v48 }
  0xfd   :  { %v4336_v1 = vpop.f32.mrb[4].mxu0 }
  0xfe   :  { %v4338_v2 = vpop.f32.mrb[5].mxu0 }
  0xff   :  { %v4340_v3 = vpop.f32.mrb[6].mxu0  ;;  %v181_v52 = vadd.f32 %v4250_v43, %v4338_v2  ;;  %v3840_v2 = vld [vmem:[%s4927_s3 + $0xc4] ss:$8 sps:$4 sm:$0xff]  }
 0x100   :  { %v4342_v4 = vpop.f32.mrb[7].mxu0 }
 0x103   :  { %v3915_v49 = vpop.eup %3914 }
 0x104   :  { %v226_v50 = vpack.c.bf16 %v3915_v49, %v3915_v49 }
 0x106   :  { %455 = vmatmul.mubr.bf16.vlgmr.msra.gmra.mrb[0].mxu1 %v226_v50  ;;  %v4522_v50 = vld [vmem:[%s4927_s3 + $0xb4] ss:$8 sps:$4 sm:$0xff]  }
 0x107   :  { %904 = vmatpush1.bf16.msra.mxu1 %v4014_v6 }
 0x108   :  { %905 = vmatprep.subr.bf16.mxu1 %v4023_v8 }
 0x10b   :  { %906 = vmatpush1.bf16.msra.mxu1 %v4029_v9 }
 0x10c   :  { %907 = vmatprep.subr.bf16.mxu1 %v4035_v10 }
 0x10f   :  { %908 = vmatpush1.bf16.msra.mxu1 %v4044_v12 }
 0x110   :  { %909 = vmatprep.subr.bf16.mxu1 %v4050_v13 }
 0x113   :  { %910 = vmatpush1.bf16.msra.mxu1 %v4059_v15 }
 0x114   :  { %911 = vmatprep.subr.bf16.mxu1 %v4065_v16 }
 0x117   :  { %912 = vmatpush1.bf16.msra.mxu1 %v4074_v18 }
 0x118   :  { %913 = vmatprep.subr.bf16.mxu1 %v4079_v19 }
 0x11b   :  { %914 = vmatpush1.bf16.msra.mxu1 %v4085_v20 }
 0x11c   :  { %915 = vmatprep.subr.bf16.mxu1 %v4093_v22 }
 0x11f   :  { %916 = vmatpush1.bf16.msra.mxu1 %v4100_v23 }
 0x120   :  { %917 = vmatprep.subr.bf16.mxu1 %v4105_v24 }
 0x123   :  { %918 = vmatpush1.bf16.msra.mxu1 %v4113_v25 }
 0x124   :  { %919 = vmatprep.subr.bf16.mxu1 %v4119_v26 }
 0x127   :  { %920 = vmatpush1.bf16.msra.mxu1 %v4130_v27 }
 0x128   :  { %921 = vmatprep.subr.bf16.mxu1 %v4136_v28 }
 0x12b   :  { %922 = vmatpush1.bf16.msra.mxu1 %v4144_v29 }
 0x12c   :  { %923 = vmatprep.subr.bf16.mxu1 %v4150_v30 }
 0x12f   :  { %924 = vmatpush1.bf16.msra.mxu1 %v4158_v31 }
 0x130   :  { %925 = vmatprep.subr.bf16.mxu1 %v4164_v32 }
 0x133   :  { %926 = vmatpush1.bf16.msra.mxu1 %v4172_v33 }
 0x134   :  { %927 = vmatprep.subr.bf16.mxu1 %v4192_v34 }
 0x137   :  { %928 = vmatpush1.bf16.msra.mxu1 %v4197_v35 }
 0x138   :  { %929 = vmatprep.subr.bf16.mxu1 %v4206_v36 }
 0x13b   :  { %930 = vmatpush1.bf16.msra.mxu1 %v4211_v37 }
 0x13c   :  { %931 = vmatprep.subr.bf16.mxu1 %v4220_v38 }
 0x13f   :  { %932 = vmatpush1.bf16.msra.mxu1 %v4225_v39 }
 0x140   :  { %933 = vmatprep.subr.bf16.mxu1 %v4234_v40 }
 0x143   :  { %934 = vmatpush1.bf16.msra.mxu1 %v4239_v41 }
 0x144   :  { %1385 = vmatprep.subr.bf16.mxu1 %v4009_v5  ;;  %v173_v5 = vadd.f32 %v4252_v44, %v4250_v43  ;;  %v4510_v44 = vld [vmem:[%s4927_s3 + $0xa4] ss:$8 sps:$4 sm:$0xff]  }
 0x1d9   :  { %v456_v55 = vpop.f32.mrb[0].mxu1 }
 0x1da   :  { %v457_v56 = vadd.f32 %v456_v55, %v168_v53  ;;  %v458_v57 = vpop.f32.mrb[1].mxu1 }
 0x1db   :  { %v459_v58 = vadd.f32 %v4299_v54, %v458_v57  ;;  %v460_v59 = vpop.f32.mrb[2].mxu1 }
 0x1dc   :  { %3916 = vtanh.f32 %v457_v56  ;;  %v461_v60 = vpop.f32.mrb[3].mxu1 }
 0x1dd   :  { %3918 = vtanh.f32 %v459_v58 }
 0x1e6   :  { %v3917_v61 = vpop.eup %3916 }
 0x1e7   :  { %v3919_v62 = vpop.eup %3918  ;;  %v466_v0 = vpack.c.bf16 %v3917_v61, %v3917_v61 }
 0x1e8   :  { %v4302_v63 = vpack.c.bf16 %v3919_v62, %v3919_v62 }
 0x1ea   :  { %694 = vmatprep.mubr.bf16.mxu0 %v4302_v63 }
 0x1eb   :  { %695 = vmatmul.mubr.bf16.vlgmr.msra.gmra.mrb[8].mxu0 %v466_v0 }
 0x1ec   :  { %1145 = vmatpush1.bf16.msra.mxu0 %v4014_v6 }
 0x1ed   :  { %1146 = vmatprep.subr.bf16.mxu0 %v4023_v8 }
 0x1f0   :  { %1147 = vmatpush1.bf16.msra.mxu0 %v4029_v9 }
 0x1f1   :  { %1148 = vmatprep.subr.bf16.mxu0 %v4035_v10 }
 0x1f4   :  { %1149 = vmatpush1.bf16.msra.mxu0 %v4044_v12 }
 0x1f5   :  { %1150 = vmatprep.subr.bf16.mxu0 %v4050_v13 }
 0x1f8   :  { %1151 = vmatpush1.bf16.msra.mxu0 %v4059_v15 }
 0x1f9   :  { %1152 = vmatprep.subr.bf16.mxu0 %v4065_v16 }
 0x1fc   :  { %1153 = vmatpush1.bf16.msra.mxu0 %v4074_v18 }
 0x1fd   :  { %1154 = vmatprep.subr.bf16.mxu0 %v4079_v19 }
 0x200   :  { %1155 = vmatpush1.bf16.msra.mxu0 %v4085_v20 }
 0x201   :  { %1156 = vmatprep.subr.bf16.mxu0 %v4093_v22 }
 0x204   :  { %1157 = vmatpush1.bf16.msra.mxu0 %v4100_v23 }
 0x205   :  { %1158 = vmatprep.subr.bf16.mxu0 %v4105_v24 }
 0x208   :  { %1159 = vmatpush1.bf16.msra.mxu0 %v4113_v25 }
 0x209   :  { %1160 = vmatprep.subr.bf16.mxu0 %v4119_v26 }
 0x20c   :  { %1161 = vmatpush1.bf16.msra.mxu0 %v4130_v27 }
 0x20d   :  { %1162 = vmatprep.subr.bf16.mxu0 %v4136_v28 }
 0x210   :  { %1163 = vmatpush1.bf16.msra.mxu0 %v4144_v29 }
 0x211   :  { %1164 = vmatprep.subr.bf16.mxu0 %v4150_v30 }
 0x214   :  { %1165 = vmatpush1.bf16.msra.mxu0 %v4158_v31 }
 0x215   :  { %1166 = vmatprep.subr.bf16.mxu0 %v4164_v32 }
 0x218   :  { %1167 = vmatpush1.bf16.msra.mxu0 %v4172_v33 }
 0x219   :  { %1168 = vmatprep.subr.bf16.mxu0 %v4192_v34 }
 0x21c   :  { %1169 = vmatpush1.bf16.msra.mxu0 %v4197_v35 }
 0x21d   :  { %1170 = vmatprep.subr.bf16.mxu0 %v4206_v36 }
 0x220   :  { %1171 = vmatpush1.bf16.msra.mxu0 %v4211_v37 }
 0x221   :  { %1172 = vmatprep.subr.bf16.mxu0 %v4220_v38 }
 0x224   :  { %1173 = vmatpush1.bf16.msra.mxu0 %v4225_v39 }
 0x225   :  { %1174 = vmatprep.subr.bf16.mxu0 %v4234_v40 }
 0x228   :  { %1175 = vmatpush1.bf16.msra.mxu0 %v4239_v41 }
 0x2be   :  { %v696_v7 = vpop.f32.mrb[8].mxu0 }
 0x2bf   :  { %v697_v11 = vadd.f32 %v696_v7, %v173_v5  ;;  %v698_v14 = vpop.f32.mrb[9].mxu0  ;;  %v3838_v5 = vld [vmem:[%s4927_s3 + $0xc0] ss:$8 sps:$4 sm:$0xff]   ;;  %v3843_v7 = vld [vmem:[%s4927_s3 + $0xd4] ss:$8 sps:$4 sm:$0xff]  }
 0x2c0   :  { %v699_v17 = vadd.f32 %v4299_v54, %v698_v14  ;;  %v700_v21 = vpop.f32.mrb[10].mxu0  ;;  %v3846_v14 = vld [vmem:[%s4927_s3 + $0xe4] ss:$8 sps:$4 sm:$0xff]  }
 0x2c1   :  { %3920 = vtanh.f32 %v697_v11  ;;  %v701_v42 = vpop.f32.mrb[11].mxu0  ;;  %v3841_v11 = vld [vmem:[%s4927_s3 + $0xd0] ss:$8 sps:$4 sm:$0xff]   ;;  %v3849_v21 = vld [vmem:[%s4927_s3 + $0xf4] ss:$8 sps:$4 sm:$0xff]  }
 0x2c2   :  { %3922 = vtanh.f32 %v699_v17  ;;  %v3844_v17 = vld [vmem:[%s4927_s3 + $0xe0] ss:$8 sps:$4 sm:$0xff]   ;;  %v3847_v42 = vld [vmem:[%s4927_s3 + $0xf0] ss:$8 sps:$4 sm:$0xff]  }
 0x2cb   :  { %v3921_v45 = vpop.eup %3920 }
 0x2cc   :  { %v3923_v46 = vpop.eup %3922  ;;  %v707_v49 = vpack.c.bf16 %v3921_v45, %v3921_v45  ;;  %v184_v45 = vadd.f32 %v4250_v43, %v4342_v4  ;;  %v3949_v4 = vmov 0.0  }
 0x2cd   :  { %v4347_v48 = vpack.c.bf16 %v3923_v46, %v3923_v46 }
 0x2cf   :  { %935 = vmatprep.mubr.bf16.mxu1 %v4347_v48 }
 0x2d0   :  { %936 = vmatmul.mubr.bf16.vlgmr.msra.gmra.mrb[4].mxu1 %v707_v49 }
 0x2d1   :  { %1386 = vmatpush1.bf16.msra.mxu1 %v4014_v6  ;;  %v176_v6 = vadd.f32 %v4255_v47, %v4250_v43  ;;  %v4516_v47 = vld [vmem:[%s4927_s3 + $0xa0] ss:$8 sps:$4 sm:$0xff]  }
 0x2d2   :  { %1387 = vmatprep.subr.bf16.mxu1 %v4023_v8 }
 0x2d5   :  { %1388 = vmatpush1.bf16.msra.mxu1 %v4029_v9 }
 0x2d6   :  { %1389 = vmatprep.subr.bf16.mxu1 %v4035_v10 }
 0x2d9   :  { %1390 = vmatpush1.bf16.msra.mxu1 %v4044_v12 }
 0x2da   :  { %1391 = vmatprep.subr.bf16.mxu1 %v4050_v13 }
 0x2dd   :  { %1392 = vmatpush1.bf16.msra.mxu1 %v4059_v15 }
 0x2de   :  { %1393 = vmatprep.subr.bf16.mxu1 %v4065_v16 }
 0x2e1   :  { %1394 = vmatpush1.bf16.msra.mxu1 %v4074_v18 }
 0x2e2   :  { %1395 = vmatprep.subr.bf16.mxu1 %v4079_v19 }
 0x2e5   :  { %1396 = vmatpush1.bf16.msra.mxu1 %v4085_v20 }
 0x2e6   :  { %1397 = vmatprep.subr.bf16.mxu1 %v4093_v22  ;;  %v4390_v22 = vld [vmem:[%s4927_s3] ss:$8 sps:$4 sm:$0xff]  }
 0x2e9   :  { %1398 = vmatpush1.bf16.msra.mxu1 %v4100_v23  ;;  %v4395_v23 = vld [vmem:[%s4927_s3 + $0x4] ss:$8 sps:$4 sm:$0xff]  }
 0x2ea   :  { %1399 = vmatprep.subr.bf16.mxu1 %v4105_v24  ;;  %v4400_v24 = vld [vmem:[%s4927_s3 + $0x14] ss:$8 sps:$4 sm:$0xff]   ;;  %1626 = vmatprep.subr.bf16.mxu0 %v4395_v23 }
 0x2ed   :  { %1400 = vmatpush1.bf16.msra.mxu1 %v4113_v25  ;;  %v4408_v25 = vld [vmem:[%s4927_s3 + $0x10] ss:$8 sps:$4 sm:$0xff]  }
 0x2ee   :  { %1401 = vmatprep.subr.bf16.mxu1 %v4119_v26  ;;  %v4414_v26 = vld [vmem:[%s4927_s3 + $0x24] ss:$8 sps:$4 sm:$0xff]  }
 0x2f1   :  { %1402 = vmatpush1.bf16.msra.mxu1 %v4130_v27  ;;  %v4420_v27 = vld [vmem:[%s4927_s3 + $0x20] ss:$8 sps:$4 sm:$0xff]  }
 0x2f2   :  { %1403 = vmatprep.subr.bf16.mxu1 %v4136_v28  ;;  %v4426_v28 = vld [vmem:[%s4927_s3 + $0x34] ss:$8 sps:$4 sm:$0xff]  }
 0x2f5   :  { %1404 = vmatpush1.bf16.msra.mxu1 %v4144_v29  ;;  %v4432_v29 = vld [vmem:[%s4927_s3 + $0x30] ss:$8 sps:$4 sm:$0xff]  }
 0x2f6   :  { %1405 = vmatprep.subr.bf16.mxu1 %v4150_v30  ;;  %v4438_v30 = vld [vmem:[%s4927_s3 + $0x44] ss:$8 sps:$4 sm:$0xff]  }
 0x2f9   :  { %1406 = vmatpush1.bf16.msra.mxu1 %v4158_v31  ;;  %v4444_v31 = vld [vmem:[%s4927_s3 + $0x40] ss:$8 sps:$4 sm:$0xff]  }
 0x2fa   :  { %1407 = vmatprep.subr.bf16.mxu1 %v4164_v32  ;;  %v4450_v32 = vld [vmem:[%s4927_s3 + $0x54] ss:$8 sps:$4 sm:$0xff]  }
 0x2fd   :  { %1408 = vmatpush1.bf16.msra.mxu1 %v4172_v33  ;;  %v4456_v33 = vld [vmem:[%s4927_s3 + $0x50] ss:$8 sps:$4 sm:$0xff]  }
 0x2fe   :  { %1409 = vmatprep.subr.bf16.mxu1 %v4192_v34  ;;  %v4462_v34 = vld [vmem:[%s4927_s3 + $0x64] ss:$8 sps:$4 sm:$0xff]  }
 0x301   :  { %1410 = vmatpush1.bf16.msra.mxu1 %v4197_v35  ;;  %v4468_v35 = vld [vmem:[%s4927_s3 + $0x60] ss:$8 sps:$4 sm:$0xff]  }
 0x302   :  { %1411 = vmatprep.subr.bf16.mxu1 %v4206_v36  ;;  %v4474_v36 = vld [vmem:[%s4927_s3 + $0x74] ss:$8 sps:$4 sm:$0xff]  }
 0x305   :  { %1412 = vmatpush1.bf16.msra.mxu1 %v4211_v37  ;;  %v4480_v37 = vld [vmem:[%s4927_s3 + $0x70] ss:$8 sps:$4 sm:$0xff]  }
 0x306   :  { %1413 = vmatprep.subr.bf16.mxu1 %v4220_v38  ;;  %v4486_v38 = vld [vmem:[%s4927_s3 + $0x84] ss:$8 sps:$4 sm:$0xff]  }
 0x309   :  { %1414 = vmatpush1.bf16.msra.mxu1 %v4225_v39  ;;  %v4492_v39 = vld [vmem:[%s4927_s3 + $0x80] ss:$8 sps:$4 sm:$0xff]  }
 0x30a   :  { %1415 = vmatprep.subr.bf16.mxu1 %v4234_v40  ;;  %v4498_v40 = vld [vmem:[%s4927_s3 + $0x94] ss:$8 sps:$4 sm:$0xff]  }
 0x30d   :  { %1416 = vmatpush1.bf16.msra.mxu1 %v4239_v41  ;;  %v4504_v41 = vld [vmem:[%s4927_s3 + $0x90] ss:$8 sps:$4 sm:$0xff]  }
 0x30e   :  { %1867 = vmatprep.subr.bf16.mxu1 %v4395_v23 }
 0x3a3   :  { %v937_v8 = vpop.f32.mrb[4].mxu1 }
 0x3a4   :  { %v938_v9 = vadd.f32 %v937_v8, %v176_v6  ;;  %v939_v10 = vpop.f32.mrb[5].mxu1 }
 0x3a5   :  { %v940_v12 = vadd.f32 %v4299_v54, %v939_v10  ;;  %v941_v13 = vpop.f32.mrb[6].mxu1 }
 0x3a6   :  { %3924 = vtanh.f32 %v938_v9  ;;  %v942_v15 = vpop.f32.mrb[7].mxu1 }
 0x3a7   :  { %3926 = vtanh.f32 %v940_v12 }
 0x3b0   :  { %v3925_v16 = vpop.eup %3924 }
 0x3b1   :  { %v3927_v18 = vpop.eup %3926  ;;  %v948_v20 = vpack.c.bf16 %v3925_v16, %v3925_v16 }
 0x3b2   :  { %v4384_v19 = vpack.c.bf16 %v3927_v18, %v3927_v18  ;;  %v189_v18 = vadd.f32 %v4336_v1, %v4250_v43  ;;  %v3851_v43 = vld [vmem:[%s4930_s5 + $0x48] sm:$0xff]   ;;  %v3853_v1 = vld [vmem:[%s4930_s5 + $0x58] sm:$0xff]  }
 0x3b4   :  { %1176 = vmatprep.mubr.bf16.mxu0 %v4384_v19 }
 0x3b5   :  { %1177 = vmatmul.mubr.bf16.vlgmr.msra.gmra.mrb[12].mxu0 %v948_v20 }
 0x3b6   :  { %1627 = vmatpush1.bf16.msra.mxu0 %v4390_v22 }
 0x3b7   :  { %1628 = vmatprep.subr.bf16.mxu0 %v4400_v24 }
 0x3ba   :  { %1629 = vmatpush1.bf16.msra.mxu0 %v4408_v25 }
 0x3bb   :  { %1630 = vmatprep.subr.bf16.mxu0 %v4414_v26 }
 0x3be   :  { %1631 = vmatpush1.bf16.msra.mxu0 %v4420_v27 }
 0x3bf   :  { %1632 = vmatprep.subr.bf16.mxu0 %v4426_v28 }
 0x3c2   :  { %1633 = vmatpush1.bf16.msra.mxu0 %v4432_v29 }
 0x3c3   :  { %1634 = vmatprep.subr.bf16.mxu0 %v4438_v30 }
 0x3c6   :  { %1635 = vmatpush1.bf16.msra.mxu0 %v4444_v31 }
 0x3c7   :  { %1636 = vmatprep.subr.bf16.mxu0 %v4450_v32 }
 0x3ca   :  { %1637 = vmatpush1.bf16.msra.mxu0 %v4456_v33 }
 0x3cb   :  { %1638 = vmatprep.subr.bf16.mxu0 %v4462_v34 }
 0x3ce   :  { %1639 = vmatpush1.bf16.msra.mxu0 %v4468_v35 }
 0x3cf   :  { %1640 = vmatprep.subr.bf16.mxu0 %v4474_v36 }
 0x3d2   :  { %1641 = vmatpush1.bf16.msra.mxu0 %v4480_v37 }
 0x3d3   :  { %1642 = vmatprep.subr.bf16.mxu0 %v4486_v38 }
 0x3d6   :  { %1643 = vmatpush1.bf16.msra.mxu0 %v4492_v39 }
 0x3d7   :  { %1644 = vmatprep.subr.bf16.mxu0 %v4498_v40 }
 0x3da   :  { %1645 = vmatpush1.bf16.msra.mxu0 %v4504_v41 }
 0x3db   :  { %1646 = vmatprep.subr.bf16.mxu0 %v4510_v44 }
 0x3de   :  { %1647 = vmatpush1.bf16.msra.mxu0 %v4516_v47 }
 0x3df   :  { %1648 = vmatprep.subr.bf16.mxu0 %v4522_v50 }
 0x3e2   :  { %1649 = vmatpush1.bf16.msra.mxu0 %v4528_v51 }
 0x3e3   :  { %1650 = vmatprep.subr.bf16.mxu0 %v3840_v2 }
 0x3e6   :  { %1651 = vmatpush1.bf16.msra.mxu0 %v3838_v5 }
 0x3e7   :  { %1652 = vmatprep.subr.bf16.mxu0 %v3843_v7 }
 0x3ea   :  { %1653 = vmatpush1.bf16.msra.mxu0 %v3841_v11 }
 0x3eb   :  { %1654 = vmatprep.subr.bf16.mxu0 %v3846_v14 }
 0x3ee   :  { %1655 = vmatpush1.bf16.msra.mxu0 %v3844_v17 }
 0x3ef   :  { %1656 = vmatprep.subr.bf16.mxu0 %v3849_v21 }
 0x3f2   :  { %1657 = vmatpush1.bf16.msra.mxu0 %v3847_v42 }
 0x3f3   :  { %2107 = vmatprep.subr.bf16.mxu0 %v4395_v23 }
 0x488   :  { %v1178_v53 = vpop.f32.mrb[12].mxu0 }
 0x489   :  { %v1179_v55 = vadd.f32 %v1178_v53, %v181_v52  ;;  %v1180_v56 = vpop.f32.mrb[13].mxu0  ;;  %v3870_v52 = vld [vmem:[%s4930_s5 + $0x120] sm:$0xff]   ;;  %v3871_v53 = vld [vmem:[%s4930_s5 + $0x128] sm:$0xff]  }
 0x48a   :  { %v1181_v57 = vadd.f32 %v4299_v54, %v1180_v56  ;;  %v1182_v58 = vpop.f32.mrb[14].mxu0  ;;  %v3873_v56 = vld [vmem:[%s4930_s5 + $0x138] sm:$0xff]  }
 0x48b   :  { %3928 = vtanh.f32 %v1179_v55  ;;  %v1183_v59 = vpop.f32.mrb[15].mxu0  ;;  %v3872_v55 = vld [vmem:[%s4930_s5 + $0x130] sm:$0xff]   ;;  %v3875_v58 = vld [vmem:[%s4930_s5 + $0x188] sm:$0xff]  }
 0x48c   :  { %3930 = vtanh.f32 %v1181_v57  ;;  %v3874_v57 = vld [vmem:[%s4930_s5 + $0x180] sm:$0xff]   ;;  %v3876_v59 = vld [vmem:[%s4930_s5 + $0x190] sm:$0xff]  }
 0x495   :  { %v3929_v60 = vpop.eup %3928 }
 0x496   :  { %v3931_v61 = vpop.eup %3930  ;;  %v1189_v0 = vpack.c.bf16 %v3929_v60, %v3929_v60  ;;  %v3877_v60 = vld [vmem:[%s4930_s5 + $0x198] sm:$0xff]  }
 0x497   :  { %v4535_v62 = vpack.c.bf16 %v3931_v61, %v3931_v61  ;;  %v3878_v61 = vld [vmem:[%s4930_s5 + $0x1a0] sm:$0xff]  }
 0x499   :  { %1417 = vmatprep.mubr.bf16.mxu1 %v4535_v62 }
 0x49a   :  { %1418 = vmatmul.mubr.bf16.vlgmr.msra.gmra.mrb[8].mxu1 %v1189_v0  ;;  %v3879_v0 = vld [vmem:[%s4930_s5 + $0x1a8] sm:$0xff]  }
 0x49b   :  { %1868 = vmatpush1.bf16.msra.mxu1 %v4390_v22 }
 0x49c   :  { %1869 = vmatprep.subr.bf16.mxu1 %v4400_v24 }
 0x49f   :  { %1870 = vmatpush1.bf16.msra.mxu1 %v4408_v25 }
 0x4a0   :  { %1871 = vmatprep.subr.bf16.mxu1 %v4414_v26 }
 0x4a3   :  { %1872 = vmatpush1.bf16.msra.mxu1 %v4420_v27 }
 0x4a4   :  { %1873 = vmatprep.subr.bf16.mxu1 %v4426_v28 }
 0x4a7   :  { %1874 = vmatpush1.bf16.msra.mxu1 %v4432_v29 }
 0x4a8   :  { %1875 = vmatprep.subr.bf16.mxu1 %v4438_v30 }
 0x4ab   :  { %1876 = vmatpush1.bf16.msra.mxu1 %v4444_v31 }
 0x4ac   :  { %1877 = vmatprep.subr.bf16.mxu1 %v4450_v32 }
 0x4af   :  { %1878 = vmatpush1.bf16.msra.mxu1 %v4456_v33 }
 0x4b0   :  { %1879 = vmatprep.subr.bf16.mxu1 %v4462_v34 }
 0x4b3   :  { %1880 = vmatpush1.bf16.msra.mxu1 %v4468_v35 }
 0x4b4   :  { %1881 = vmatprep.subr.bf16.mxu1 %v4474_v36 }
 0x4b7   :  { %1882 = vmatpush1.bf16.msra.mxu1 %v4480_v37 }
 0x4b8   :  { %1883 = vmatprep.subr.bf16.mxu1 %v4486_v38 }
 0x4bb   :  { %1884 = vmatpush1.bf16.msra.mxu1 %v4492_v39 }
 0x4bc   :  { %1885 = vmatprep.subr.bf16.mxu1 %v4498_v40 }
 0x4bf   :  { %1886 = vmatpush1.bf16.msra.mxu1 %v4504_v41 }
 0x4c0   :  { %1887 = vmatprep.subr.bf16.mxu1 %v4510_v44 }
 0x4c3   :  { %1888 = vmatpush1.bf16.msra.mxu1 %v4516_v47 }
 0x4c4   :  { %1889 = vmatprep.subr.bf16.mxu1 %v4522_v50 }
 0x4c7   :  { %1890 = vmatpush1.bf16.msra.mxu1 %v4528_v51 }
 0x4c8   :  { %1891 = vmatprep.subr.bf16.mxu1 %v3840_v2 }
 0x4cb   :  { %1892 = vmatpush1.bf16.msra.mxu1 %v3838_v5 }
 0x4cc   :  { %1893 = vmatprep.subr.bf16.mxu1 %v3843_v7 }
 0x4cf   :  { %1894 = vmatpush1.bf16.msra.mxu1 %v3841_v11 }
 0x4d0   :  { %1895 = vmatprep.subr.bf16.mxu1 %v3846_v14 }
 0x4d3   :  { %1896 = vmatpush1.bf16.msra.mxu1 %v3844_v17 }
 0x4d4   :  { %1897 = vmatprep.subr.bf16.mxu1 %v3849_v21 }
 0x4d7   :  { %1898 = vmatpush1.bf16.msra.mxu1 %v3847_v42 }
 0x4d8   :  { %3579 = vmatprep.subr.bf16.mxu1 %v3949_v4 }
 0x56d   :  { %v1419_v46 = vpop.f32.mrb[8].mxu1 }
 0x56e   :  { %v1420_v49 = vadd.f32 %v1419_v46, %v184_v45  ;;  %v1421_v6 = vpop.f32.mrb[9].mxu1 }
 0x56f   :  { %v1422_v8 = vadd.f32 %v4299_v54, %v1421_v6  ;;  %v1423_v9 = vpop.f32.mrb[10].mxu1 }
 0x570   :  { %3932 = vtanh.f32 %v1420_v49  ;;  %v1424_v10 = vpop.f32.mrb[11].mxu1 }
 0x571   :  { %3934 = vtanh.f32 %v1422_v8 }
 0x57a   :  { %v3933_v12 = vpop.eup %3932 }
 0x57b   :  { %v3935_v13 = vpop.eup %3934  ;;  %v1430_v16 = vpack.c.bf16 %v3933_v12, %v3933_v12  ;;  %v3883_v12 = vld [vmem:[%s4930_s5 + $0x8] sm:$0xff]  }
 0x57c   :  { %v4589_v15 = vpack.c.bf16 %v3935_v13, %v3935_v13  ;;  %v3884_v13 = vld [vmem:[%s4930_s5 + $0x10] sm:$0xff]  }
 0x57e   :  { %1658 = vmatprep.mubr.bf16.mxu0 %v4589_v15 }
 0x57f   :  { %1659 = vmatmul.mubr.bf16.vlgmr.msra.gmra.mrb[16].mxu0 %v1430_v16  ;;  %v3886_v16 = vld [vmem:[%s4930_s5 + $0x20] sm:$0xff]  }
 0x580   :  { %2108 = vmatpush1.bf16.msra.mxu0 %v4390_v22 }
 0x581   :  { %2109 = vmatprep.subr.bf16.mxu0 %v4400_v24 }
 0x584   :  { %2110 = vmatpush1.bf16.msra.mxu0 %v4408_v25 }
 0x585   :  { %2111 = vmatprep.subr.bf16.mxu0 %v4414_v26 }
 0x588   :  { %2112 = vmatpush1.bf16.msra.mxu0 %v4420_v27 }
 0x589   :  { %2113 = vmatprep.subr.bf16.mxu0 %v4426_v28 }
 0x58c   :  { %2114 = vmatpush1.bf16.msra.mxu0 %v4432_v29 }
 0x58d   :  { %2115 = vmatprep.subr.bf16.mxu0 %v4438_v30  ;;  %v3850_v30 = vld [vmem:[%s4930_s5 + $0x40] sm:$0xff]  }
 0x590   :  { %2116 = vmatpush1.bf16.msra.mxu0 %v4444_v31 }
 0x591   :  { %2117 = vmatprep.subr.bf16.mxu0 %v4450_v32  ;;  %v3854_v32 = vld [vmem:[%s4930_s5 + $0x60] sm:$0xff]  }
 0x594   :  { %2118 = vmatpush1.bf16.msra.mxu0 %v4456_v33  ;;  %v3855_v33 = vld [vmem:[%s4930_s5 + $0x68] sm:$0xff]  }
 0x595   :  { %2119 = vmatprep.subr.bf16.mxu0 %v4462_v34  ;;  %v3856_v34 = vld [vmem:[%s4930_s5 + $0x70] sm:$0xff]  }
 0x598   :  { %2120 = vmatpush1.bf16.msra.mxu0 %v4468_v35  ;;  %v3857_v35 = vld [vmem:[%s4930_s5 + $0x78] sm:$0xff]  }
 0x599   :  { %2121 = vmatprep.subr.bf16.mxu0 %v4474_v36  ;;  %v3858_v36 = vld [vmem:[%s4930_s5 + $0x80] sm:$0xff]  }
 0x59c   :  { %2122 = vmatpush1.bf16.msra.mxu0 %v4480_v37  ;;  %v3859_v37 = vld [vmem:[%s4930_s5 + $0x88] sm:$0xff]  }
 0x59d   :  { %2123 = vmatprep.subr.bf16.mxu0 %v4486_v38  ;;  %v3860_v38 = vld [vmem:[%s4930_s5 + $0x90] sm:$0xff]  }
 0x5a0   :  { %2124 = vmatpush1.bf16.msra.mxu0 %v4492_v39  ;;  %v3862_v39 = vld [vmem:[%s4930_s5 + $0xa0] sm:$0xff]  }
 0x5a1   :  { %2125 = vmatprep.subr.bf16.mxu0 %v4498_v40  ;;  %v3863_v40 = vld [vmem:[%s4930_s5 + $0xa8] sm:$0xff]  }
 0x5a4   :  { %2126 = vmatpush1.bf16.msra.mxu0 %v4504_v41  ;;  %v3864_v41 = vld [vmem:[%s4930_s5 + $0xb0] sm:$0xff]  }
 0x5a5   :  { %2127 = vmatprep.subr.bf16.mxu0 %v4510_v44  ;;  %v3865_v44 = vld [vmem:[%s4930_s5 + $0xb8] sm:$0xff]  }
 0x5a8   :  { %2128 = vmatpush1.bf16.msra.mxu0 %v4516_v47  ;;  %v3866_v47 = vld [vmem:[%s4930_s5 + $0x100] sm:$0xff]  }
 0x5a9   :  { %2129 = vmatprep.subr.bf16.mxu0 %v4522_v50  ;;  %v3867_v50 = vld [vmem:[%s4930_s5 + $0x108] sm:$0xff]  }
 0x5ac   :  { %2130 = vmatpush1.bf16.msra.mxu0 %v4528_v51  ;;  %v3868_v51 = vld [vmem:[%s4930_s5 + $0x110] sm:$0xff]  }
 0x5ad   :  { %2131 = vmatprep.subr.bf16.mxu0 %v3840_v2  ;;  %v3880_v2 = vld [vmem:[%s4930_s5 + $0x1b0] sm:$0xff]  }
 0x5b0   :  { %2132 = vmatpush1.bf16.msra.mxu0 %v3838_v5  ;;  %v3881_v5 = vld [vmem:[%s4930_s5 + $0x1b8] sm:$0xff]  }
 0x5b1   :  { %2133 = vmatprep.subr.bf16.mxu0 %v3843_v7  ;;  %v3946_v7 = vld [vmem:[%s4928_s2] ss:$0 sm:$0xff] }
 0x5b4   :  { %2134 = vmatpush1.bf16.msra.mxu0 %v3841_v11  ;;  %v192_v11 = vadd.f32 %v3946_v7, %v4340_v3  ;;  %v3882_v3 = vld [vmem:[%s4930_s5] sm:$0xff]  }
 0x5b5   :  { %2135 = vmatprep.subr.bf16.mxu0 %v3846_v14 }
 0x5b8   :  { %2136 = vmatpush1.bf16.msra.mxu0 %v3844_v17 }
 0x5b9   :  { %2137 = vmatprep.subr.bf16.mxu0 %v3849_v21 }
 0x5bc   :  { %2138 = vmatpush1.bf16.msra.mxu0 %v3847_v42  ;;  %v4768_v42 = vld [vmem:[%s4929_s4] ss:$0 sm:$0xff] }
 0x5bd   :  { %3599 = vmatprep.subr.bf16.mxu0 %v3949_v4 }
 0x652   :  { %v1660_v20 = vpop.f32.mrb[16].mxu0 }
 0x653   :  { %v1661_v22 = vadd.f32 %v1660_v20, %v189_v18  ;;  %v1662_v23 = vpop.f32.mrb[17].mxu0 }
 0x654   :  { %v1663_v24 = vadd.f32 %v4299_v54, %v1662_v23  ;;  %v1664_v25 = vpop.f32.mrb[18].mxu0  ;;  %v3852_v54 = vld [vmem:[%s4930_s5 + $0x50] sm:$0xff]  }
 0x655   :  { %3936 = vtanh.f32 %v1661_v22  ;;  %v1665_v26 = vpop.f32.mrb[19].mxu0  ;;  %v3888_v25 = vld [vmem:[%s4930_s5 + $0x30] sm:$0xff]  }
 0x656   :  { %3938 = vtanh.f32 %v1663_v24  ;;  %v3887_v24 = vld [vmem:[%s4930_s5 + $0x28] sm:$0xff]   ;;  %v3889_v26 = vld [vmem:[%s4930_s5 + $0x38] sm:$0xff]  }
 0x65f   :  { %v3937_v27 = vpop.eup %3936 }
 0x660   :  { %v3939_v28 = vpop.eup %3938  ;;  %v1671_v31 = vpack.c.bf16 %v3937_v27, %v3937_v27  ;;  %v3890_v27 = vld [vmem:[%s4930_s5 + $0xc0] sm:$0xff]  }
 0x661   :  { %v4620_v29 = vpack.c.bf16 %v3939_v28, %v3939_v28  ;;  %v3891_v28 = vld [vmem:[%s4930_s5 + $0xc8] sm:$0xff]  }
 0x663   :  { %1899 = vmatprep.mubr.bf16.mxu1 %v4620_v29 }
 0x664   :  { %1900 = vmatmul.mubr.bf16.vlgmr.msra.gmra.mrb[12].mxu1 %v1671_v31  ;;  %v3894_v31 = vld [vmem:[%s4930_s5 + $0xe0] sm:$0xff]  }
 0x665   :  { %3580 = vmatpush3.bf16.msra.mxu1 %v3850_v30  ;;  %3595 = vmatprep.mubr.msk.bf16.mxu1 %vm3950_vm0, %v3949_v4  ;;  %v3892_v30 = vld [vmem:[%s4930_s5 + $0xd0] sm:$0xff]  }
 0x666   :  { %3581 = vmatprep.subr.bf16.mxu1 %v3949_v4 }
 0x669   :  { %3582 = vmatpush3.bf16.msra.mxu1 %v3851_v43 }
 0x66a   :  { %3583 = vmatprep.subr.bf16.mxu1 %v3949_v4 }
 0x66d   :  { %3584 = vmatpush3.bf16.msra.mxu1 %v3852_v54 }
 0x66e   :  { %3585 = vmatprep.subr.bf16.mxu1 %v3949_v4 }
 0x671   :  { %3586 = vmatpush3.bf16.msra.mxu1 %v3853_v1 }
 0x672   :  { %3587 = vmatprep.subr.bf16.mxu1 %v3949_v4 }
 0x675   :  { %3588 = vmatpush3.bf16.msra.mxu1 %v3854_v32 }
 0x676   :  { %3589 = vmatprep.subr.bf16.mxu1 %v3949_v4 }
 0x679   :  { %3590 = vmatpush3.bf16.msra.mxu1 %v3855_v33  ;;  %v3895_v33 = vld [vmem:[%s4930_s5 + $0xe8] sm:$0xff]  }
 0x67a   :  { %3591 = vmatprep.subr.bf16.mxu1 %v3949_v4 }
 0x67d   :  { %3592 = vmatpush3.bf16.msra.mxu1 %v3856_v34  ;;  %v3896_v34 = vld [vmem:[%s4930_s5 + $0xf0] sm:$0xff]  }
 0x67e   :  { %3593 = vmatprep.subr.bf16.mxu1 %v3949_v4 }
 0x681   :  { %3594 = vmatpush3.bf16.msra.mxu1 %v3857_v35  ;;  %v3897_v35 = vld [vmem:[%s4930_s5 + $0xf8] sm:$0xff]  }
 0x682   :  { %3619 = vmatprep.subr.bf16.mxu1 %v3949_v4 }
 0x684   :  { %3596 = vmatmul.mubr.bf16.vlgmr.msra.gmra.mrb[16].mxu1 %v4347_v48  ;;  %v3861_v48 = vld [vmem:[%s4930_s5 + $0x98] sm:$0xff]  }
 0x685   :  { %3620 = vmatpush3.bf16.msra.mxu1 %v3858_v36  ;;  %3635 = vmatprep.mubr.msk.bf16.mxu1 %vm3950_vm0, %v3949_v4  ;;  %v3898_v36 = vld [vmem:[%s4930_s5 + $0x140] sm:$0xff]  }
 0x686   :  { %3621 = vmatprep.subr.bf16.mxu1 %v3949_v4 }
 0x689   :  { %3622 = vmatpush3.bf16.msra.mxu1 %v3859_v37  ;;  %v3899_v37 = vld [vmem:[%s4930_s5 + $0x148] sm:$0xff]  }
 0x68a   :  { %3623 = vmatprep.subr.bf16.mxu1 %v3949_v4 }
 0x68d   :  { %3624 = vmatpush3.bf16.msra.mxu1 %v3860_v38  ;;  %v3900_v38 = vld [vmem:[%s4930_s5 + $0x150] sm:$0xff]  }
 0x68e   :  { %3625 = vmatprep.subr.bf16.mxu1 %v3949_v4 }
 0x691   :  { %3626 = vmatpush3.bf16.msra.mxu1 %v3861_v48  ;;  %v3902_v48 = vld [vmem:[%s4930_s5 + $0x160] sm:$0xff]  }
 0x692   :  { %3627 = vmatprep.subr.bf16.mxu1 %v3949_v4 }
 0x695   :  { %3628 = vmatpush3.bf16.msra.mxu1 %v3862_v39 }
 0x696   :  { %3629 = vmatprep.subr.bf16.mxu1 %v3949_v4 }
 0x699   :  { %3630 = vmatpush3.bf16.msra.mxu1 %v3863_v40 }
 0x69a   :  { %3631 = vmatprep.subr.bf16.mxu1 %v3949_v4 }
 0x69d   :  { %3632 = vmatpush3.bf16.msra.mxu1 %v3864_v41 }
 0x69e   :  { %3633 = vmatprep.subr.bf16.mxu1 %v3949_v4 }
 0x6a1   :  { %3634 = vmatpush3.bf16.msra.mxu1 %v3865_v44 }
 0x6a2   :  { %3659 = vmatprep.subr.bf16.mxu1 %v3949_v4 }
 0x6a4   :  { %3636 = vmatmul.mubr.bf16.vlgmr.msra.gmra.mrb[20].mxu1 %v4384_v19  ;;  %v3869_v19 = vld [vmem:[%s4930_s5 + $0x118] sm:$0xff]  }
 0x6a5   :  { %3660 = vmatpush3.bf16.msra.mxu1 %v3866_v47  ;;  %3675 = vmatprep.mubr.msk.bf16.mxu1 %vm3950_vm0, %v3949_v4  ;;  %v3903_v47 = vld [vmem:[%s4930_s5 + $0x168] sm:$0xff]  }
 0x6a6   :  { %3661 = vmatprep.subr.bf16.mxu1 %v3949_v4 }
 0x6a9   :  { %3662 = vmatpush3.bf16.msra.mxu1 %v3867_v50  ;;  %v3904_v50 = vld [vmem:[%s4930_s5 + $0x170] sm:$0xff]  }
 0x6aa   :  { %3663 = vmatprep.subr.bf16.mxu1 %v3949_v4 }
 0x6ad   :  { %3664 = vmatpush3.bf16.msra.mxu1 %v3868_v51  ;;  %v3905_v51 = vld [vmem:[%s4930_s5 + $0x178] sm:$0xff]  }
 0x6ae   :  { %3665 = vmatprep.subr.bf16.mxu1 %v3949_v4 }
 0x6b1   :  { %3666 = vmatpush3.bf16.msra.mxu1 %v3869_v19  ;;  %v3906_v19 = vld [vmem:[%s4930_s5 + $0x1c0] sm:$0xff]  }
 0x6b2   :  { %3667 = vmatprep.subr.bf16.mxu1 %v3949_v4 }
 0x6b5   :  { %3668 = vmatpush3.bf16.msra.mxu1 %v3870_v52  ;;  %v3907_v52 = vld [vmem:[%s4930_s5 + $0x1c8] sm:$0xff]  }
 0x6b6   :  { %3669 = vmatprep.subr.bf16.mxu1 %v3949_v4 }
 0x6b9   :  { %3670 = vmatpush3.bf16.msra.mxu1 %v3871_v53  ;;  %v3908_v53 = vld [vmem:[%s4930_s5 + $0x1d0] sm:$0xff]  }
 0x6ba   :  { %3671 = vmatprep.subr.bf16.mxu1 %v3949_v4 }
 0x6bd   :  { %3672 = vmatpush3.bf16.msra.mxu1 %v3872_v55  ;;  %v3910_v55 = vld [vmem:[%s4930_s5 + $0x1e0] sm:$0xff]  }
 0x6be   :  { %3673 = vmatprep.subr.bf16.mxu1 %v3949_v4 }
 0x6c1   :  { %3674 = vmatpush3.bf16.msra.mxu1 %v3873_v56  ;;  %v3911_v56 = vld [vmem:[%s4930_s5 + $0x1e8] sm:$0xff]  }
 0x6c2   :  { %3699 = vmatprep.subr.bf16.mxu1 %v3949_v4 }
 0x6c4   :  { %3676 = vmatmul.mubr.bf16.vlgmr.msra.gmra.mrb[24].mxu1 %v4589_v15  ;;  %v3885_v15 = vld [vmem:[%s4930_s5 + $0x18] sm:$0xff]  }
 0x6c5   :  { %3700 = vmatpush3.bf16.msra.mxu1 %v3874_v57  ;;  %3715 = vmatprep.mubr.msk.bf16.mxu1 %vm3950_vm0, %v3949_v4  ;;  %v3912_v57 = vld [vmem:[%s4930_s5 + $0x1f0] sm:$0xff]  }
 0x6c6   :  { %3701 = vmatprep.subr.bf16.mxu1 %v3949_v4 }
 0x6c9   :  { %3702 = vmatpush3.bf16.msra.mxu1 %v3875_v58  ;;  %v3913_v58 = vld [vmem:[%s4930_s5 + $0x1f8] sm:$0xff]  }
 0x6ca   :  { %3703 = vmatprep.subr.bf16.mxu1 %v3949_v4 }
 0x6cd   :  { %3704 = vmatpush3.bf16.msra.mxu1 %v3876_v59 }
 0x6ce   :  { %3705 = vmatprep.subr.bf16.mxu1 %v3949_v4 }
 0x6d1   :  { %3706 = vmatpush3.bf16.msra.mxu1 %v3877_v60 }
 0x6d2   :  { %3707 = vmatprep.subr.bf16.mxu1 %v3949_v4 }
 0x6d5   :  { %3708 = vmatpush3.bf16.msra.mxu1 %v3878_v61 }
 0x6d6   :  { %3709 = vmatprep.subr.bf16.mxu1 %v3949_v4 }
 0x6d9   :  { %3710 = vmatpush3.bf16.msra.mxu1 %v3879_v0 }
 0x6da   :  { %3711 = vmatprep.subr.bf16.mxu1 %v3949_v4 }
 0x6dd   :  { %3712 = vmatpush3.bf16.msra.mxu1 %v3880_v2 }
 0x6de   :  { %3713 = vmatprep.subr.bf16.mxu1 %v3949_v4 }
 0x6e1   :  { %3714 = vmatpush3.bf16.msra.mxu1 %v3881_v5 }
 0x737   :  { %v1901_v14 = vpop.f32.mrb[12].mxu1 }
 0x738   :  { %v1902_v17 = vadd.f32 %v1901_v14, %v192_v11  ;;  %v1903_v21 = vpop.f32.mrb[13].mxu1 }
 0x739   :  { %v1904_v45 = vadd.f32 %v4768_v42, %v1903_v21  ;;  %v1905_v46 = vpop.f32.mrb[14].mxu1 }
 0x73a   :  { %3940 = vtanh.f32 %v1902_v17  ;;  %v1906_v49 = vpop.f32.mrb[15].mxu1 }
 0x73b   :  { %3942 = vtanh.f32 %v1904_v45 }
 0x744   :  { %v3941_v6 = vpop.eup %3940 }
 0x745   :  { %v3943_v8 = vpop.eup %3942  ;;  %v1912_v10 = vpack.c.bf16 %v3941_v6, %v3941_v6 }
 0x746   :  { %v1913_v9 = vpack.c.bf16 %v3943_v8, %v3943_v8 }
 0x748   :  { %2139 = vmatprep.mubr.bf16.mxu0 %v1913_v9  ;;  %3716 = vmatmul.mubr.bf16.vlgmr.msra.gmra.mrb[28].mxu1 %v1913_v9 }
 0x749   :  { %2140 = vmatmul.mubr.bf16.vlgmr.msra.gmra.mrb[20].mxu0 %v1912_v10 }
 0x74a   :  { %3600 = vmatpush3.bf16.msra.mxu0 %v3882_v3  ;;  %3615 = vmatprep.mubr.msk.bf16.mxu0 %vm3950_vm0, %v3949_v4 }
 0x74b   :  { %3601 = vmatprep.subr.bf16.mxu0 %v3949_v4 }
 0x74e   :  { %3602 = vmatpush3.bf16.msra.mxu0 %v3883_v12 }
 0x74f   :  { %3603 = vmatprep.subr.bf16.mxu0 %v3949_v4 }
 0x752   :  { %3604 = vmatpush3.bf16.msra.mxu0 %v3884_v13 }
 0x753   :  { %3605 = vmatprep.subr.bf16.mxu0 %v3949_v4 }
 0x756   :  { %3606 = vmatpush3.bf16.msra.mxu0 %v3885_v15 }
 0x757   :  { %v4791_v18 = vpop.f32.mrb[16].mxu1  ;;  %3607 = vmatprep.subr.bf16.mxu0 %v3949_v4 }
 0x758   :  { %v3597_v20 = vpop.f32.mrb[17].mxu1 }
 0x759   :  { %v2272_v22 = vpop.f32.mrb[18].mxu1 }
 0x75a   :  { %v3598_v23 = vpop.f32.mrb[19].mxu1  ;;  %3608 = vmatpush3.bf16.msra.mxu0 %v3886_v16 }
 0x75b   :  { %3609 = vmatprep.subr.bf16.mxu0 %v3949_v4 }
 0x75e   :  { %3610 = vmatpush3.bf16.msra.mxu0 %v3887_v24 }
 0x75f   :  { %3611 = vmatprep.subr.bf16.mxu0 %v3949_v4 }
 0x762   :  { %3612 = vmatpush3.bf16.msra.mxu0 %v3888_v25 }
 0x763   :  { %3613 = vmatprep.subr.bf16.mxu0 %v3949_v4 }
 0x766   :  { %3614 = vmatpush3.bf16.msra.mxu0 %v3889_v26 }
 0x767   :  { %3639 = vmatprep.subr.bf16.mxu0 %v3949_v4 }
 0x769   :  { %3616 = vmatmul.mubr.bf16.vlgmr.msra.gmra.mrb[24].mxu0 %v4302_v63  ;;  %v3893_v63 = vld [vmem:[%s4930_s5 + $0xd8] sm:$0xff]  }
 0x76a   :  { %3640 = vmatpush3.bf16.msra.mxu0 %v3890_v27  ;;  %3655 = vmatprep.mubr.msk.bf16.mxu0 %vm3950_vm0, %v3949_v4 }
 0x76b   :  { %3641 = vmatprep.subr.bf16.mxu0 %v3949_v4 }
 0x76e   :  { %3642 = vmatpush3.bf16.msra.mxu0 %v3891_v28 }
 0x76f   :  { %3643 = vmatprep.subr.bf16.mxu0 %v3949_v4 }
 0x772   :  { %3644 = vmatpush3.bf16.msra.mxu0 %v3892_v30 }
 0x773   :  { %3645 = vmatprep.subr.bf16.mxu0 %v3949_v4 }
 0x776   :  { %3646 = vmatpush3.bf16.msra.mxu0 %v3893_v63 }
 0x777   :  { %v4828_v43 = vpop.f32.mrb[20].mxu1  ;;  %3647 = vmatprep.subr.bf16.mxu0 %v3949_v4 }
 0x778   :  { %v3637_v54 = vpop.f32.mrb[21].mxu1 }
 0x779   :  { %v2467_v1 = vpop.f32.mrb[22].mxu1 }
 0x77a   :  { %v3638_v32 = vpop.f32.mrb[23].mxu1  ;;  %3648 = vmatpush3.bf16.msra.mxu0 %v3894_v31 }
 0x77b   :  { %3649 = vmatprep.subr.bf16.mxu0 %v3949_v4 }
 0x77e   :  { %3650 = vmatpush3.bf16.msra.mxu0 %v3895_v33 }
 0x77f   :  { %3651 = vmatprep.subr.bf16.mxu0 %v3949_v4 }
 0x782   :  { %3652 = vmatpush3.bf16.msra.mxu0 %v3896_v34 }
 0x783   :  { %3653 = vmatprep.subr.bf16.mxu0 %v3949_v4 }
 0x786   :  { %3654 = vmatpush3.bf16.msra.mxu0 %v3897_v35 }
 0x787   :  { %3679 = vmatprep.subr.bf16.mxu0 %v3949_v4 }
 0x789   :  { %3656 = vmatmul.mubr.bf16.vlgmr.msra.gmra.mrb[28].mxu0 %v4535_v62  ;;  %v3901_v62 = vld [vmem:[%s4930_s5 + $0x158] sm:$0xff]  }
 0x78a   :  { %3680 = vmatpush3.bf16.msra.mxu0 %v3898_v36  ;;  %3695 = vmatprep.mubr.msk.bf16.mxu0 %vm3950_vm0, %v3949_v4 }
 0x78b   :  { %3681 = vmatprep.subr.bf16.mxu0 %v3949_v4 }
 0x78e   :  { %3682 = vmatpush3.bf16.msra.mxu0 %v3899_v37 }
 0x78f   :  { %3683 = vmatprep.subr.bf16.mxu0 %v3949_v4 }
 0x792   :  { %3684 = vmatpush3.bf16.msra.mxu0 %v3900_v38 }
 0x793   :  { %3685 = vmatprep.subr.bf16.mxu0 %v3949_v4 }
 0x796   :  { %3686 = vmatpush3.bf16.msra.mxu0 %v3901_v62 }
 0x797   :  { %v4865_v39 = vpop.f32.mrb[24].mxu1  ;;  %3687 = vmatprep.subr.bf16.mxu0 %v3949_v4 }
 0x798   :  { %v3677_v40 = vpop.f32.mrb[25].mxu1 }
 0x799   :  { %v2683_v41 = vpop.f32.mrb[26].mxu1 }
 0x79a   :  { %v3678_v44 = vpop.f32.mrb[27].mxu1  ;;  %3688 = vmatpush3.bf16.msra.mxu0 %v3902_v48 }
 0x79b   :  { %3689 = vmatprep.subr.bf16.mxu0 %v3949_v4 }
 0x79e   :  { %3690 = vmatpush3.bf16.msra.mxu0 %v3903_v47 }
 0x79f   :  { %3691 = vmatprep.subr.bf16.mxu0 %v3949_v4 }
 0x7a2   :  { %3692 = vmatpush3.bf16.msra.mxu0 %v3904_v50 }
 0x7a3   :  { %3693 = vmatprep.subr.bf16.mxu0 %v3949_v4 }
 0x7a6   :  { %3694 = vmatpush3.bf16.msra.mxu0 %v3905_v51 }
 0x7a7   :  { %3719 = vmatprep.subr.bf16.mxu0 %v3949_v4 }
 0x7a9   :  { %3696 = vmatmul.mubr.bf16.vlgmr.msra.gmra.mrb[32].mxu0 %v4620_v29  ;;  %v3909_v29 = vld [vmem:[%s4930_s5 + $0x1d8] sm:$0xff]  }
 0x7aa   :  { %3720 = vmatpush3.bf16.msra.mxu0 %v3906_v19  ;;  %3735 = vmatprep.mubr.msk.bf16.mxu0 %vm3950_vm0, %v3949_v4 }
 0x7ab   :  { %3721 = vmatprep.subr.bf16.mxu0 %v3949_v4 }
 0x7ae   :  { %3722 = vmatpush3.bf16.msra.mxu0 %v3907_v52 }
 0x7af   :  { %3723 = vmatprep.subr.bf16.mxu0 %v3949_v4 }
 0x7b2   :  { %3724 = vmatpush3.bf16.msra.mxu0 %v3908_v53 }
 0x7b3   :  { %3725 = vmatprep.subr.bf16.mxu0 %v3949_v4 }
 0x7b6   :  { %3726 = vmatpush3.bf16.msra.mxu0 %v3909_v29 }
 0x7b7   :  { %3727 = vmatprep.subr.bf16.mxu0 %v3949_v4 }
 0x7ba   :  { %3728 = vmatpush3.bf16.msra.mxu0 %v3910_v55 }
 0x7bb   :  { %3729 = vmatprep.subr.bf16.mxu0 %v3949_v4 }
 0x7be   :  { %3730 = vmatpush3.bf16.msra.mxu0 %v3911_v56 }
 0x7bf   :  { %3731 = vmatprep.subr.bf16.mxu0 %v3949_v4 }
 0x7c2   :  { %3732 = vmatpush3.bf16.msra.mxu0 %v3912_v57 }
 0x7c3   :  { %3733 = vmatprep.subr.bf16.mxu0 %v3949_v4 }
 0x7c6   :  { %3734 = vmatpush3.bf16.msra.mxu0 %v3913_v58 }
 0x81b   :  { %v2896_v59 = vpop.f32.mrb[28].mxu1 }
 0x81c   :  { %v2141_v60 = vpop.f32.mrb[20].mxu0  ;;  %v3717_v61 = vpop.f32.mrb[29].mxu1 }
 0x81d   :  { %v2142_v0 = vpop.f32.mrb[21].mxu0  ;;  %v2899_v2 = vpop.f32.mrb[30].mxu1 }
 0x81e   :  { %v2143_v5 = vadd.f32 %v4768_v42, %v2142_v0  ;;  %v2144_v7 = vpop.f32.mrb[22].mxu0  ;;  %v3718_v11 = vpop.f32.mrb[31].mxu1 }
 0x81f   :  { %v2145_v14 = vpop.f32.mrb[23].mxu0 }
 0x820   :  { %3944 = vtanh.f32 %v2143_v5 }
 0x82a   :  { %v3945_v17 = vpop.eup %3944 }
 0x82b   :  { %v2904_v21 = vpack.c.bf16 %v3945_v17, %v3945_v17 }
 0x82d   :  { %3736 = vmatmul.mubr.bf16.vlgmr.msra.gmra.mrb[36].mxu0 %v2904_v21 }
 0x83c   :  { %v2357_v45 = vpop.f32.mrb[24].mxu0 }
 0x83d   :  { %v2358_v46 = vadd.f32 %v2357_v45, %v4791_v18  ;;  %v3617_v49 = vpop.f32.mrb[25].mxu0  ;;  %v3470_v18 = vld [vmem:[%s4931_s6] ss:$0 sm:$0xff] }
 0x83e   :  { %v2360_v4 = vpop.f32.mrb[26].mxu0 }
 0x83f   :  { %v3618_v6 = vpop.f32.mrb[27].mxu0  ;;  %v2470_v8 = vadd.f32 %v4828_v43, %v2358_v46 }
 0x85c   :  { %v2572_v9 = vpop.f32.mrb[28].mxu0 }
 0x85d   :  { %v2578_v3 = vadd.f32 %v2572_v9, %v2470_v8  ;;  %v3657_v10 = vpop.f32.mrb[29].mxu0 }
 0x85e   :  { %v2575_v12 = vpop.f32.mrb[30].mxu0 }
 0x85f   :  { %v3658_v42 = vpop.f32.mrb[31].mxu0  ;;  %v2686_v13 = vadd.f32 %v4865_v39, %v2578_v3 }
 0x87c   :  { %v2788_v15 = vpop.f32.mrb[32].mxu0 }
 0x87d   :  { %v2794_v16 = vadd.f32 %v2788_v15, %v2686_v13  ;;  %v3697_v20 = vpop.f32.mrb[33].mxu0 }
 0x87e   :  { %v2791_v22 = vpop.f32.mrb[34].mxu0 }
 0x87f   :  { %v3698_v23 = vpop.f32.mrb[35].mxu0  ;;  %v2902_v24 = vadd.f32 %v2896_v59, %v2794_v16 }
 0x900   :  { %v3004_v25 = vpop.f32.mrb[36].mxu0 }
 0x901   :  { %v3010_v26 = vadd.f32 %v3004_v25, %v2902_v24  ;;  %v3737_v27 = vpop.f32.mrb[37].mxu0 }
 0x902   :  { %v3007_v28 = vpop.f32.mrb[38].mxu0 }
 0x903   :  { %v3018_v30 = vadd.f32 %v3470_v18, %v3010_v26  ;;  %v3738_v63 = vpop.f32.mrb[39].mxu0 }
 0x905   :  { %3019 = vst [vmem:[%s4932_s7] sm:$0xff] %v3018_v30 }

</bundles_post_ra>
